<compile_context>
chip_gen: v5e
topology: v5e:2x2
jax: 0.10.0
libtpu: 0.0.40
codegen_flags: <defaults>
</compile_context>

<pallas_src>
import functools

import jax
import jax.numpy as jnp
from jax import lax
from jax.experimental import pallas as pl
from jax.experimental.pallas import tpu as pltpu


def _round_up(x, m):
    return (x + m - 1) // m * m


def _physical_vmem_bytes():
    try:
        return int(pltpu.get_tpu_info().vmem_capacity_bytes)
    except Exception:
        return 64 * 1024 * 1024  # v7x per-TC VMEM: the safe lower bound across generations


def _estimate_vmem_bytes(bb, hp, src_len, tile_v, num_tiles):
    """Rough double-buffered VMEM footprint of the kernel (bytes)."""
    f4, b2 = 4, 2
    vp = tile_v * num_tiles
    est = 0
    est += 2 * 2 * bb * hp * f4              # embedded input + previous hidden blocks
    est += 2 * bb * src_len * hp * f4        # encoder outputs block
    est += 2 * 2 * hp * 3 * hp * b2          # W_ih^T, W_hh^T (bf16)
    est += 2 * 2 * 8 * 3 * hp * f4           # b_ih, b_hh (sublane padded)
    est += 2 * 2 * hp * hp * b2              # W_concat halves (bf16)
    est += 2 * 8 * hp * f4                   # b_concat
    est += 2 * hp * tile_v * b2              # streamed W_out tile (double buffered)
    est += 2 * 8 * tile_v * f4               # streamed b_out tile
    est += 2 * bb * vp * f4                  # resident softmax output block
    est += 2 * bb * hp * f4                  # new-hidden output block
    est += bb * hp * b2 + 2 * bb * 128 * f4  # c_scr (bf16) + running max/sum scratches
    return est


def decoder_step_kernel(emb_ref, h_ref, enc_ref,
                        wih_ref, whh_ref, bih_ref, bhh_ref,
                        wch_ref, wcc_ref, bc_ref,
                        wo_ref, bo_ref,
                        out_ref, hid_ref,
                        c_scr, m_scr, s_scr,
                        *, tile_v, num_tiles):
    j = pl.program_id(1)          # V-tile index (innermost, "arbitrary" axis)
    Hp = h_ref.shape[1]
    wdt = wih_ref.dtype           # bf16 weights, f32 accumulation on the MXU

    # ---- stage 1 (first V tile only): GRU cell + dot attention + concat ----
    @pl.when(j == 0)
    def _():
        x = emb_ref[...]                                        # (BB, Hp) embedded tokens
        h = h_ref[...]                                          # (BB, Hp) previous hidden
        gi = jnp.dot(x.astype(wdt), wih_ref[...],
                     preferred_element_type=jnp.float32) + bih_ref[...]
        gh = jnp.dot(h.astype(wdt), whh_ref[...],
                     preferred_element_type=jnp.float32) + bhh_ref[...]
        # PyTorch GRU gate order (r, z, n); per-gate padding keeps slices 128-aligned.
        r = jax.nn.sigmoid(gi[:, :Hp] + gh[:, :Hp])
        z = jax.nn.sigmoid(gi[:, Hp:2 * Hp] + gh[:, Hp:2 * Hp])
        n = jnp.tanh(gi[:, 2 * Hp:] + r * gh[:, 2 * Hp:])
        h_new = (1.0 - z) * n + z * h                           # (BB, Hp)

        # Dot attention on VPU + XLU reductions (L is tiny; M=1 MXU dots are badly shaped).
        enc = enc_ref[...]                                      # (BB, L, Hp)
        scores = jnp.sum(h_new[:, None, :] * enc, axis=-1)      # (BB, L)
        sm = jnp.max(scores, axis=-1, keepdims=True)
        e = jnp.exp(scores - sm)
        attn = e * pl.reciprocal(jnp.sum(e, axis=-1, keepdims=True), approx=True)
        context = jnp.sum(attn[:, :, None] * enc, axis=1)       # (BB, Hp)

        cat = jnp.tanh(
            jnp.dot(h_new.astype(wdt), wch_ref[...],
                    preferred_element_type=jnp.float32)
            + jnp.dot(context.astype(wdt), wcc_ref[...],
                      preferred_element_type=jnp.float32)
            + bc_ref[...])                                      # (BB, Hp)

        c_scr[...] = cat.astype(c_scr.dtype)   # bf16 cast once; reused by every V tile
        hid_ref[...] = h_new                   # output block resident across j (index (i, 0))
        m_scr[...] = jnp.full_like(m_scr, -jnp.inf)
        s_scr[...] = jnp.zeros_like(s_scr)

    # ---- stage 2 (every V tile): streamed projection + online softmax stats ----
    logits = jnp.dot(c_scr[...], wo_ref[...],
                     preferred_element_type=jnp.float32) + bo_ref[...]   # (BB, tile_v)
    start = pl.multiple_of(j * tile_v, tile_v)
    out_ref[:, pl.ds(start, tile_v)] = logits   # raw logits parked in the resident out block
    m_prev = m_scr[...]
    m_new = jnp.maximum(m_prev, jnp.max(logits, axis=-1, keepdims=True))
    s_scr[...] = (s_scr[...] * jnp.exp(m_prev - m_new)
                  + jnp.sum(jnp.exp(logits - m_new), axis=-1, keepdims=True))
    m_scr[...] = m_new

    # ---- stage 3 (last V tile): normalize the resident logits tile-by-tile ----
    @pl.when(j == num_tiles - 1)
    def _():
        m_f = m_scr[...]
        inv = 1.0 / s_scr[...]      # exact normalization: output rows sum to 1

        def body(t, carry):
            st = pl.multiple_of(t * tile_v, tile_v)
            lg = out_ref[:, pl.ds(st, tile_v)]
            out_ref[:, pl.ds(st, tile_v)] = jnp.exp(lg - m_f) * inv
            return carry

        lax.fori_loop(0, num_tiles, body, 0)


def prepare_params(params, *, tile_v=2048, max_batch_block=128, max_src_len=64):
    """One-time weight packing (hoisted out of the decode step).

    Transposes / per-gate zero-pads / bf16-casts every weight once, bakes a
    -1e30 bias into padded vocab columns, and sizes the streamed W_out tile
    against the chip's VMEM. Reuse the returned `packed` for every decode step.
    """
    H = params["w_ih"].shape[1]
    V = params["w_out"].shape[0]
    Hp = _round_up(H, 128)
    f32 = jnp.float32
    # TODO(synk): int8 W_out (+per-tile scales) on v5e/v6e and fp8 on v7x to halve
    # the dominant HBM stream; bf16 keeps this drop-in accurate for now.
    wdt = jnp.bfloat16

    tile_v = _round_up(min(tile_v, _round_up(V, 128)), 128)
    num_tiles = pl.cdiv(V, tile_v)

    # Per-generation VMEM sizing: shrink the streamed W_out tile until the
    # worst-case (max_batch_block) footprint fits this chip's VMEM.
    phys = _physical_vmem_bytes()
    budget = int(0.85 * phys)
    while (_estimate_vmem_bytes(max_batch_block, Hp, max_src_len, tile_v, num_tiles) > budget
           and tile_v > 128):
        tile_v = max(128, _round_up(tile_v // 2, 128))
        num_tiles = pl.cdiv(V, tile_v)
    Vp = num_tiles * tile_v
    est = _estimate_vmem_bytes(max_batch_block, Hp, max_src_len, tile_v, num_tiles)
    vmem_limit = int(min(max(est + (8 << 20), 32 << 20), int(0.95 * phys)))

    # GRU weights: PyTorch (3H, H), gate order (r, z, n) -> per-gate transposed and
    # padded to (Hp, 3*Hp) so in-kernel gate slices are 128-aligned.
    def pack_w(w):
        out = jnp.zeros((Hp, 3 * Hp), f32)
        for g in range(3):
            out = out.at[:H, g * Hp:g * Hp + H].set(w[g * H:(g + 1) * H, :].T)
        return out.astype(wdt)

    def pack_b(b):
        out = jnp.zeros((1, 3 * Hp), f32)
        for g in range(3):
            out = out.at[0, g * Hp:g * Hp + H].set(b[g * H:(g + 1) * H])
        return out

    wc = params["w_concat"]
    packed = {
        "emb_table": jnp.zeros((params["embedding"].shape[0], Hp), f32)
                        .at[:, :H].set(params["embedding"].astype(f32)),
        "w_ih_t": pack_w(params["w_ih"]),
        "w_hh_t": pack_w(params["w_hh"]),
        "b_ih": pack_b(params["b_ih"]),
        "b_hh": pack_b(params["b_hh"]),
        "w_cat_h": jnp.zeros((Hp, Hp), f32).at[:H, :H].set(wc[:, :H].T).astype(wdt),
        "w_cat_c": jnp.zeros((Hp, Hp), f32).at[:H, :H].set(wc[:, H:].T).astype(wdt),
        "b_cat": jnp.zeros((1, Hp), f32).at[0, :H].set(params["b_concat"]),
        # Padded vocab columns get a -1e30 bias (their W_out columns are zero),
        # so they vanish in the softmax with zero in-kernel masking work.
        "w_out_t": jnp.zeros((Hp, Vp), f32).at[:H, :V].set(params["w_out"].T).astype(wdt),
        "b_out": jnp.full((1, Vp), -1e30, f32).at[0, :V].set(params["b_out"]),
    }
    meta = dict(H=H, V=V, Hp=Hp, tile_v=tile_v, num_tiles=num_tiles, Vp=Vp,
                max_batch_block=max_batch_block, vmem_limit_bytes=vmem_limit)
    return packed, meta


def luong_attn_decoder_step(input_step, last_hidden, encoder_outputs, packed, *, meta):
    """Matches LuongAttnDecoderRNN.forward (attn='dot', n_layers=1, eval mode)."""
    B = input_step.shape[1]
    L = encoder_outputs.shape[0]
    H, V, Hp = meta["H"], meta["V"], meta["Hp"]
    tile_v, num_tiles, Vp = meta["tile_v"], meta["num_tiles"], meta["Vp"]
    f32 = jnp.float32

    BB = min(_round_up(B, 8), meta["max_batch_block"])   # batch rows per grid block
    Bp = _round_up(B, BB)

    # Embedding row gather -- XLA glue fused into the same jit as the kernel.
    # TODO(synk): pull the gather into the kernel with scalar-prefetched token ids
    # and a pl.Element row-gather BlockSpec on the (pre-padded) embedding table.
    emb = packed["emb_table"][input_step[0]]              # (B, Hp); dropout = identity (eval)

    emb_p = jnp.zeros((Bp, Hp), f32).at[:B].set(emb)
    h_p = jnp.zeros((Bp, Hp), f32).at[:B, :H].set(last_hidden[0].astype(f32))
    enc_p = jnp.zeros((Bp, L, Hp), f32).at[:B, :, :H].set(
        jnp.transpose(encoder_outputs, (1, 0, 2)).astype(f32))

    kernel = functools.partial(decoder_step_kernel, tile_v=tile_v, num_tiles=num_tiles)

    out, hid = pl.pallas_call(
        kernel,
        out_shape=(jax.ShapeDtypeStruct((Bp, Vp), f32),
                   jax.ShapeDtypeStruct((Bp, Hp), f32)),
        grid_spec=pltpu.PrefetchScalarGridSpec(
            num_scalar_prefetch=0,
            grid=(Bp // BB, num_tiles),
            in_specs=[
                # TODO(synk): pipeline_mode=pl.Buffered(1) on the constant-index
                # specs below to drop their useless double-buffering (VMEM headroom
                # on v7x) once that path is exercised in CI.
                pl.BlockSpec((BB, Hp), lambda i, j: (i, 0)),        # embedded input
                pl.BlockSpec((BB, Hp), lambda i, j: (i, 0)),        # last hidden
                pl.BlockSpec((BB, L, Hp), lambda i, j: (i, 0, 0)),  # encoder outputs
                pl.BlockSpec((Hp, 3 * Hp), lambda i, j: (0, 0)),    # W_ih^T (per-gate)
                pl.BlockSpec((Hp, 3 * Hp), lambda i, j: (0, 0)),    # W_hh^T (per-gate)
                pl.BlockSpec((1, 3 * Hp), lambda i, j: (0, 0)),     # b_ih
                pl.BlockSpec((1, 3 * Hp), lambda i, j: (0, 0)),     # b_hh
                pl.BlockSpec((Hp, Hp), lambda i, j: (0, 0)),        # W_concat[:, :H]^T
                pl.BlockSpec((Hp, Hp), lambda i, j: (0, 0)),        # W_concat[:, H:]^T
                pl.BlockSpec((1, Hp), lambda i, j: (0, 0)),         # b_concat
                pl.BlockSpec((Hp, tile_v), lambda i, j: (0, j)),    # W_out^T tile (streamed)
                pl.BlockSpec((1, tile_v), lambda i, j: (0, j)),     # b_out tile
            ],
            out_specs=(
                pl.BlockSpec((BB, Vp), lambda i, j: (i, 0)),        # softmax over vocab
                pl.BlockSpec((BB, Hp), lambda i, j: (i, 0)),        # new hidden
            ),
            scratch_shapes=[
                pltpu.VMEM((BB, Hp), jnp.bfloat16),   # concat activation (bf16, cast once)
                pltpu.VMEM((BB, 1), f32),             # running row max (online softmax)
                pltpu.VMEM((BB, 1), f32),             # running sum of exp
            ],
        ),
        compiler_params=pltpu.CompilerParams(
            # TODO(synk): for tiny-batch decode on v7x, split the V-tile axis across
            # the two TensorCores (partial max/sum + small combine) instead of the
            # batch-parallel axis.
            dimension_semantics=("parallel", "arbitrary"),
            vmem_limit_bytes=meta["vmem_limit_bytes"],
        ),
    )(emb_p, h_p, enc_p,
      packed["w_ih_t"], packed["w_hh_t"], packed["b_ih"], packed["b_hh"],
      packed["w_cat_h"], packed["w_cat_c"], packed["b_cat"],
      packed["w_out_t"], packed["b_out"])

    # NOTE: in an autoregressive decode loop the new hidden could additionally be
    # aliased onto the incoming (padded) hidden buffer via input_output_aliases.
    return out[:B, :V], hid[None, :B, :H]


def reference_forward(input_step, last_hidden, encoder_outputs, params):
    """Pure-JAX f32 reference mirroring the PyTorch forward."""
    emb = params["embedding"][input_step[0]].astype(jnp.float32)
    h = last_hidden[0]
    H = h.shape[1]
    gi = emb @ params["w_ih"].T + params["b_ih"]
    gh = h @ params["w_hh"].T + params["b_hh"]
    r = jax.nn.sigmoid(gi[:, :H] + gh[:, :H])
    z = jax.nn.sigmoid(gi[:, H:2 * H] + gh[:, H:2 * H])
    n = jnp.tanh(gi[:, 2 * H:] + r * gh[:, 2 * H:])
    h_new = (1.0 - z) * n + z * h
    scores = jnp.sum(h_new[None, :, :] * encoder_outputs, axis=2)      # (L, B)
    attn_w = jax.nn.softmax(scores.T, axis=1)                          # (B, L)
    context = jnp.einsum("bl,lbh->bh", attn_w, encoder_outputs)        # (B, H)
    concat_in = jnp.concatenate([h_new, context], axis=1)
    concat_out = jnp.tanh(concat_in @ params["w_concat"].T + params["b_concat"])
    logits = concat_out @ params["w_out"].T + params["b_out"]
    return jax.nn.softmax(logits, axis=1), h_new[None]


def init_params(key, vocab, hidden, output_size):
    ks = jax.random.split(key, 9)
    k = 1.0 / jnp.sqrt(hidden)
    u = lambda kk, shape, s: jax.random.uniform(kk, shape, jnp.float32, -s, s)
    return {
        "embedding": u(ks[0], (vocab, hidden), 1.0),
        "w_ih":      u(ks[1], (3 * hidden, hidden), k),
        "b_ih":      u(ks[2], (3 * hidden,), k),
        "w_hh":      u(ks[3], (3 * hidden, hidden), k),
        "b_hh":      u(ks[4], (3 * hidden,), k),
        "w_concat":  u(ks[5], (hidden, 2 * hidden), 1.0 / jnp.sqrt(2 * hidden)),
        "b_concat":  u(ks[6], (hidden,), 1.0 / jnp.sqrt(2 * hidden)),
        "w_out":     u(ks[7], (output_size, hidden), k),
        "b_out":     u(ks[8], (output_size,), k),
    }


if __name__ == "__main__":
    B, H, L, VOCAB = 2, 32, 7, 300        # batch, hidden, enc seq len, output/vocab size
    key = jax.random.PRNGKey(0)
    kp, k1, k2, k3 = jax.random.split(key, 4)

    params = init_params(kp, VOCAB, H, VOCAB)
    input_step = jax.random.randint(k1, (1, B), 0, VOCAB, dtype=jnp.int32)
    last_hidden = jax.random.normal(k2, (1, B, H), dtype=jnp.float32)
    encoder_outputs = jax.random.normal(k3, (L, B, H), dtype=jnp.float32)

    # One-time weight pack (hoisted out of the step). tile_v=128 at toy vocab so
    # the streamed V-tile grid and the online-softmax finalize are exercised.
    packed, meta = prepare_params(params, tile_v=128, max_batch_block=8, max_src_len=L)

    step = jax.jit(functools.partial(luong_attn_decoder_step, meta=meta))
    out, hidden = step(input_step, last_hidden, encoder_outputs, packed)
    jax.block_until_ready((out, hidden))

    ref_out, ref_hidden = reference_forward(input_step, last_hidden,
                                            encoder_outputs, params)
    assert out.shape == (B, VOCAB) and hidden.shape == (1, B, H)
    # bf16 weights vs f32 reference -> relaxed tolerance (softmax itself is exact).
    assert jnp.allclose(out, ref_out, atol=2e-2), float(jnp.max(jnp.abs(out - ref_out)))
    assert jnp.allclose(hidden, ref_hidden, atol=2e-2), \
        float(jnp.max(jnp.abs(hidden - ref_hidden)))

    print("KERNEL_OK")
</pallas_src>

<mosaic_0001>
module attributes {stable_mosaic.version = 11 : i64} {
  func.func @decoder_step_kernel(%arg0: i32, %arg1: i32, %arg2: memref<8x128xf32, #tpu.memory_space<vmem>>, %arg3: memref<8x128xf32, #tpu.memory_space<vmem>>, %arg4: memref<8x7x128xf32, #tpu.memory_space<vmem>>, %arg5: memref<128x384xbf16, #tpu.memory_space<vmem>>, %arg6: memref<128x384xbf16, #tpu.memory_space<vmem>>, %arg7: memref<1x384xf32, #tpu.memory_space<vmem>>, %arg8: memref<1x384xf32, #tpu.memory_space<vmem>>, %arg9: memref<128x128xbf16, #tpu.memory_space<vmem>>, %arg10: memref<128x128xbf16, #tpu.memory_space<vmem>>, %arg11: memref<1x128xf32, #tpu.memory_space<vmem>>, %arg12: memref<128x128xbf16, #tpu.memory_space<vmem>>, %arg13: memref<1x128xf32, #tpu.memory_space<vmem>>, %arg14: memref<8x384xf32, #tpu.memory_space<vmem>>, %arg15: memref<8x128xf32, #tpu.memory_space<vmem>>, %arg16: memref<8x128xbf16, #tpu.memory_space<vmem>>, %arg17: memref<8x1xf32, #tpu.memory_space<vmem>>, %arg18: memref<8x1xf32, #tpu.memory_space<vmem>>) attributes {dimension_semantics = [#tpu.dimension_semantics<parallel>, #tpu.dimension_semantics<arbitrary>], iteration_bounds = array<i64: 1, 3>, scalar_prefetch = 0 : i64, scratch_operands = 3 : i64, tpu.core_type = #tpu.core_type<tc>, window_params = [{transform_indices = @transform_0, window_bounds = array<i64: 8, 128>}, {transform_indices = @transform_1, window_bounds = array<i64: 8, 128>}, {transform_indices = @transform_2, window_bounds = array<i64: 8, 7, 128>}, {pipeline_mode = #tpu.pipeline_mode<synchronous>, transform_indices = @transform_3, window_bounds = array<i64: 128, 384>}, {pipeline_mode = #tpu.pipeline_mode<synchronous>, transform_indices = @transform_4, window_bounds = array<i64: 128, 384>}, {pipeline_mode = #tpu.pipeline_mode<synchronous>, transform_indices = @transform_5, window_bounds = array<i64: 1, 384>}, {pipeline_mode = #tpu.pipeline_mode<synchronous>, transform_indices = @transform_6, window_bounds = array<i64: 1, 384>}, {pipeline_mode = #tpu.pipeline_mode<synchronous>, transform_indices = @transform_7, window_bounds = array<i64: 128, 128>}, {pipeline_mode = #tpu.pipeline_mode<synchronous>, transform_indices = @transform_8, window_bounds = array<i64: 128, 128>}, {pipeline_mode = #tpu.pipeline_mode<synchronous>, transform_indices = @transform_9, window_bounds = array<i64: 1, 128>}, {transform_indices = @transform_10, window_bounds = array<i64: 128, 128>}, {transform_indices = @transform_11, window_bounds = array<i64: 1, 128>}, {transform_indices = @transform_12, window_bounds = array<i64: 8, 384>}, {transform_indices = @transform_13, window_bounds = array<i64: 8, 128>}]} {
    %c0_i32 = arith.constant 0 : i32
    %0 = arith.cmpi eq, %arg1, %c0_i32 : i32
    %1 = arith.extui %0 : i1 to i32
    %c0_i32_0 = arith.constant 0 : i32
    %2 = arith.cmpi ne, %1, %c0_i32_0 : i32
    scf.if %2 {
      %c0_18 = arith.constant 0 : index
      %c0_19 = arith.constant 0 : index
      %32 = vector.load %arg2[%c0_18, %c0_19] : memref<8x128xf32, #tpu.memory_space<vmem>>, vector<8x128xf32>
      %c0_20 = arith.constant 0 : index
      %c0_21 = arith.constant 0 : index
      %33 = vector.load %arg3[%c0_20, %c0_21] : memref<8x128xf32, #tpu.memory_space<vmem>>, vector<8x128xf32>
      %34 = arith.truncf %32 : vector<8x128xf32> to vector<8x128xbf16>
      %c0_22 = arith.constant 0 : index
      %c0_23 = arith.constant 0 : index
      %35 = vector.load %arg5[%c0_22, %c0_23] : memref<128x384xbf16, #tpu.memory_space<vmem>>, vector<128x384xbf16>
      %cst_24 = arith.constant dense<0.000000e+00> : vector<8x384xf32>
      %36 = tpu.matmul %34, %35, %cst_24 {dimension_numbers = #tpu.dot_dimension_numbers<[1], [0], [0], [1], [0, 0, 1, 1], [], []>} : vector<8x128xbf16>, vector<128x384xbf16>, vector<8x384xf32> -> vector<8x384xf32>
      %c0_25 = arith.constant 0 : index
      %c0_26 = arith.constant 0 : index
      %37 = vector.load %arg7[%c0_25, %c0_26] : memref<1x384xf32, #tpu.memory_space<vmem>>, vector<1x384xf32>
      %38 = vector.broadcast %37 : vector<1x384xf32> to vector<8x384xf32>
      %39 = arith.addf %36, %38 : vector<8x384xf32>
      %40 = arith.truncf %33 : vector<8x128xf32> to vector<8x128xbf16>
      %c0_27 = arith.constant 0 : index
      %c0_28 = arith.constant 0 : index
      %41 = vector.load %arg6[%c0_27, %c0_28] : memref<128x384xbf16, #tpu.memory_space<vmem>>, vector<128x384xbf16>
      %cst_29 = arith.constant dense<0.000000e+00> : vector<8x384xf32>
      %42 = tpu.matmul %40, %41, %cst_29 {dimension_numbers = #tpu.dot_dimension_numbers<[1], [0], [0], [1], [0, 0, 1, 1], [], []>} : vector<8x128xbf16>, vector<128x384xbf16>, vector<8x384xf32> -> vector<8x384xf32>
      %c0_30 = arith.constant 0 : index
      %c0_31 = arith.constant 0 : index
      %43 = vector.load %arg8[%c0_30, %c0_31] : memref<1x384xf32, #tpu.memory_space<vmem>>, vector<1x384xf32>
      %44 = vector.broadcast %43 : vector<1x384xf32> to vector<8x384xf32>
      %45 = arith.addf %42, %44 : vector<8x384xf32>
      %46 = vector.extract_strided_slice %39 {offsets = [0, 0], sizes = [8, 128], strides = [1, 1]} : vector<8x384xf32> to vector<8x128xf32>
      %47 = vector.extract_strided_slice %45 {offsets = [0, 0], sizes = [8, 128], strides = [1, 1]} : vector<8x384xf32> to vector<8x128xf32>
      %48 = arith.addf %46, %47 : vector<8x128xf32>
      %49 = arith.negf %48 : vector<8x128xf32>
      %50 = math.exp %49 : vector<8x128xf32>
      %cst_32 = arith.constant 1.000000e+00 : f32
      %51 = vector.broadcast %cst_32 : f32 to vector<8x128xf32>
      %52 = arith.addf %51, %50 : vector<8x128xf32>
      %53 = arith.divf %51, %52 : vector<8x128xf32>
      %54 = vector.extract_strided_slice %39 {offsets = [0, 128], sizes = [8, 128], strides = [1, 1]} : vector<8x384xf32> to vector<8x128xf32>
      %55 = vector.extract_strided_slice %45 {offsets = [0, 128], sizes = [8, 128], strides = [1, 1]} : vector<8x384xf32> to vector<8x128xf32>
      %56 = arith.addf %54, %55 : vector<8x128xf32>
      %57 = arith.negf %56 : vector<8x128xf32>
      %58 = math.exp %57 : vector<8x128xf32>
      %cst_33 = arith.constant 1.000000e+00 : f32
      %59 = vector.broadcast %cst_33 : f32 to vector<8x128xf32>
      %60 = arith.addf %59, %58 : vector<8x128xf32>
      %61 = arith.divf %59, %60 : vector<8x128xf32>
      %62 = vector.extract_strided_slice %39 {offsets = [0, 256], sizes = [8, 128], strides = [1, 1]} : vector<8x384xf32> to vector<8x128xf32>
      %63 = vector.extract_strided_slice %45 {offsets = [0, 256], sizes = [8, 128], strides = [1, 1]} : vector<8x384xf32> to vector<8x128xf32>
      %64 = arith.mulf %53, %63 : vector<8x128xf32>
      %65 = arith.addf %62, %64 : vector<8x128xf32>
      %66 = math.tanh %65 : vector<8x128xf32>
      %cst_34 = arith.constant 1.000000e+00 : f32
      %67 = vector.broadcast %cst_34 : f32 to vector<8x128xf32>
      %68 = arith.subf %67, %61 : vector<8x128xf32>
      %69 = arith.mulf %68, %66 : vector<8x128xf32>
      %70 = arith.mulf %61, %33 : vector<8x128xf32>
      %71 = arith.addf %69, %70 : vector<8x128xf32>
      %c0_35 = arith.constant 0 : index
      %c0_36 = arith.constant 0 : index
      %c0_37 = arith.constant 0 : index
      %72 = vector.load %arg4[%c0_35, %c0_36, %c0_37] : memref<8x7x128xf32, #tpu.memory_space<vmem>>, vector<8x7x128xf32>
      %73 = vector.shape_cast %71 : vector<8x128xf32> to vector<8x1x128xf32>
      %74 = vector.broadcast %73 : vector<8x1x128xf32> to vector<8x7x128xf32>
      %75 = arith.mulf %74, %72 : vector<8x7x128xf32>
      %cst_38 = arith.constant dense<0.000000e+00> : vector<8x7xf32>
      %76 = vector.multi_reduction <add>, %75, %cst_38 [2] : vector<8x7x128xf32> to vector<8x7xf32>
      %cst_39 = arith.constant dense<0xFF800000> : vector<8xf32>
      %77 = vector.multi_reduction <maximumf>, %76, %cst_39 [1] : vector<8x7xf32> to vector<8xf32>
      %78 = vector.shape_cast %77 : vector<8xf32> to vector<8x1xf32>
      %79 = vector.broadcast %78 : vector<8x1xf32> to vector<8x7xf32>
      %80 = arith.subf %76, %79 : vector<8x7xf32>
      %81 = math.exp %80 : vector<8x7xf32>
      %cst_40 = arith.constant dense<0.000000e+00> : vector<8xf32>
      %82 = vector.multi_reduction <add>, %81, %cst_40 [1] : vector<8x7xf32> to vector<8xf32>
      %83 = vector.shape_cast %82 : vector<8xf32> to vector<8x1xf32>
      %84 = tpu.reciprocal %83 {approx = true} : vector<8x1xf32> -> vector<8x1xf32>
      %85 = vector.broadcast %84 : vector<8x1xf32> to vector<8x7xf32>
      %86 = arith.mulf %81, %85 : vector<8x7xf32>
      %87 = vector.shape_cast %86 : vector<8x7xf32> to vector<8x7x1xf32>
      %88 = vector.broadcast %87 : vector<8x7x1xf32> to vector<8x7x128xf32>
      %89 = arith.mulf %88, %72 : vector<8x7x128xf32>
      %cst_41 = arith.constant dense<0.000000e+00> : vector<8x128xf32>
      %90 = vector.multi_reduction <add>, %89, %cst_41 [1] : vector<8x7x128xf32> to vector<8x128xf32>
      %91 = arith.truncf %71 : vector<8x128xf32> to vector<8x128xbf16>
      %c0_42 = arith.constant 0 : index
      %c0_43 = arith.constant 0 : index
      %92 = vector.load %arg9[%c0_42, %c0_43] : memref<128x128xbf16, #tpu.memory_space<vmem>>, vector<128x128xbf16>
      %cst_44 = arith.constant dense<0.000000e+00> : vector<8x128xf32>
      %93 = tpu.matmul %91, %92, %cst_44 {dimension_numbers = #tpu.dot_dimension_numbers<[1], [0], [0], [1], [0, 0, 1, 1], [], []>} : vector<8x128xbf16>, vector<128x128xbf16>, vector<8x128xf32> -> vector<8x128xf32>
      %94 = arith.truncf %90 : vector<8x128xf32> to vector<8x128xbf16>
      %c0_45 = arith.constant 0 : index
      %c0_46 = arith.constant 0 : index
      %95 = vector.load %arg10[%c0_45, %c0_46] : memref<128x128xbf16, #tpu.memory_space<vmem>>, vector<128x128xbf16>
      %cst_47 = arith.constant dense<0.000000e+00> : vector<8x128xf32>
      %96 = tpu.matmul %94, %95, %cst_47 {dimension_numbers = #tpu.dot_dimension_numbers<[1], [0], [0], [1], [0, 0, 1, 1], [], []>} : vector<8x128xbf16>, vector<128x128xbf16>, vector<8x128xf32> -> vector<8x128xf32>
      %97 = arith.addf %93, %96 : vector<8x128xf32>
      %c0_48 = arith.constant 0 : index
      %c0_49 = arith.constant 0 : index
      %98 = vector.load %arg11[%c0_48, %c0_49] : memref<1x128xf32, #tpu.memory_space<vmem>>, vector<1x128xf32>
      %99 = vector.broadcast %98 : vector<1x128xf32> to vector<8x128xf32>
      %100 = arith.addf %97, %99 : vector<8x128xf32>
      %101 = math.tanh %100 : vector<8x128xf32>
      %102 = arith.truncf %101 : vector<8x128xf32> to vector<8x128xbf16>
      %c0_50 = arith.constant 0 : index
      %c0_51 = arith.constant 0 : index
      %103 = vector.load %arg16[%c0_50, %c0_51] : memref<8x128xbf16, #tpu.memory_space<vmem>>, vector<8x128xbf16>
      tpu.vector_store %arg16[%c0_50, %c0_51], %102 {strides = array<i32>} : memref<8x128xbf16, #tpu.memory_space<vmem>>, vector<8x128xbf16>,
      %c0_52 = arith.constant 0 : index
      %c0_53 = arith.constant 0 : index
      %104 = vector.load %arg15[%c0_52, %c0_53] : memref<8x128xf32, #tpu.memory_space<vmem>>, vector<8x128xf32>
      tpu.vector_store %arg15[%c0_52, %c0_53], %71 {strides = array<i32>} : memref<8x128xf32, #tpu.memory_space<vmem>>, vector<8x128xf32>,
      %cst_54 = arith.constant 0xFF800000 : f32
      %105 = vector.broadcast %cst_54 : f32 to vector<8x1xf32>
      %c0_55 = arith.constant 0 : index
      %c0_56 = arith.constant 0 : index
      %106 = vector.load %arg17[%c0_55, %c0_56] : memref<8x1xf32, #tpu.memory_space<vmem>>, vector<8x1xf32>
      tpu.vector_store %arg17[%c0_55, %c0_56], %105 {strides = array<i32>} : memref<8x1xf32, #tpu.memory_space<vmem>>, vector<8x1xf32>,
      %cst_57 = arith.constant 0.000000e+00 : f32
      %107 = vector.broadcast %cst_57 : f32 to vector<8x1xf32>
      %c0_58 = arith.constant 0 : index
      %c0_59 = arith.constant 0 : index
      %108 = vector.load %arg18[%c0_58, %c0_59] : memref<8x1xf32, #tpu.memory_space<vmem>>, vector<8x1xf32>
      tpu.vector_store %arg18[%c0_58, %c0_59], %107 {strides = array<i32>} : memref<8x1xf32, #tpu.memory_space<vmem>>, vector<8x1xf32>,
    } else {
    }
    %c0 = arith.constant 0 : index
    %c0_1 = arith.constant 0 : index
    %3 = vector.load %arg16[%c0, %c0_1] : memref<8x128xbf16, #tpu.memory_space<vmem>>, vector<8x128xbf16>
    %c0_2 = arith.constant 0 : index
    %c0_3 = arith.constant 0 : index
    %4 = vector.load %arg12[%c0_2, %c0_3] : memref<128x128xbf16, #tpu.memory_space<vmem>>, vector<128x128xbf16>
    %cst = arith.constant dense<0.000000e+00> : vector<8x128xf32>
    %5 = tpu.matmul %3, %4, %cst {dimension_numbers = #tpu.dot_dimension_numbers<[1], [0], [0], [1], [0, 0, 1, 1], [], []>} : vector<8x128xbf16>, vector<128x128xbf16>, vector<8x128xf32> -> vector<8x128xf32>
    %c0_4 = arith.constant 0 : index
    %c0_5 = arith.constant 0 : index
    %6 = vector.load %arg13[%c0_4, %c0_5] : memref<1x128xf32, #tpu.memory_space<vmem>>, vector<1x128xf32>
    %7 = vector.broadcast %6 : vector<1x128xf32> to vector<8x128xf32>
    %8 = arith.addf %5, %7 : vector<8x128xf32>
    %c128_i32 = arith.constant 128 : i32
    %9 = arith.muli %arg1, %c128_i32 : i32
    %10 = tpu.assume_multiple %9, 128 : i32
    %c0_6 = arith.constant 0 : index
    %11 = arith.index_cast %10 : i32 to index
    %12 = vector.load %arg14[%c0_6, %11] : memref<8x384xf32, #tpu.memory_space<vmem>>, vector<8x128xf32>
    tpu.vector_store %arg14[%c0_6, %11], %8 {strides = array<i32>} : memref<8x384xf32, #tpu.memory_space<vmem>>, vector<8x128xf32>,
    %c0_7 = arith.constant 0 : index
    %c0_8 = arith.constant 0 : index
    %13 = vector.load %arg17[%c0_7, %c0_8] : memref<8x1xf32, #tpu.memory_space<vmem>>, vector<8x1xf32>
    %cst_9 = arith.constant dense<0xFF800000> : vector<8xf32>
    %14 = vector.multi_reduction <maximumf>, %8, %cst_9 [1] : vector<8x128xf32> to vector<8xf32>
    %15 = vector.shape_cast %14 : vector<8xf32> to vector<8x1xf32>
    %16 = arith.maximumf %13, %15 : vector<8x1xf32>
    %c0_10 = arith.constant 0 : index
    %c0_11 = arith.constant 0 : index
    %17 = vector.load %arg18[%c0_10, %c0_11] : memref<8x1xf32, #tpu.memory_space<vmem>>, vector<8x1xf32>
    %18 = arith.subf %13, %16 : vector<8x1xf32>
    %19 = math.exp %18 : vector<8x1xf32>
    %20 = arith.mulf %17, %19 : vector<8x1xf32>
    %21 = vector.broadcast %16 : vector<8x1xf32> to vector<8x128xf32>
    %22 = arith.subf %8, %21 : vector<8x128xf32>
    %23 = math.exp %22 : vector<8x128xf32>
    %cst_12 = arith.constant dense<0.000000e+00> : vector<8xf32>
    %24 = vector.multi_reduction <add>, %23, %cst_12 [1] : vector<8x128xf32> to vector<8xf32>
    %25 = vector.shape_cast %24 : vector<8xf32> to vector<8x1xf32>
    %26 = arith.addf %20, %25 : vector<8x1xf32>
    %c0_13 = arith.constant 0 : index
    %c0_14 = arith.constant 0 : index
    %27 = vector.load %arg18[%c0_13, %c0_14] : memref<8x1xf32, #tpu.memory_space<vmem>>, vector<8x1xf32>
    tpu.vector_store %arg18[%c0_13, %c0_14], %26 {strides = array<i32>} : memref<8x1xf32, #tpu.memory_space<vmem>>, vector<8x1xf32>,
    %c0_15 = arith.constant 0 : index
    %c0_16 = arith.constant 0 : index
    %28 = vector.load %arg17[%c0_15, %c0_16] : memref<8x1xf32, #tpu.memory_space<vmem>>, vector<8x1xf32>
    tpu.vector_store %arg17[%c0_15, %c0_16], %16 {strides = array<i32>} : memref<8x1xf32, #tpu.memory_space<vmem>>, vector<8x1xf32>,
    %c2_i32 = arith.constant 2 : i32
    %29 = arith.cmpi eq, %arg1, %c2_i32 : i32
    %30 = arith.extui %29 : i1 to i32
    %c0_i32_17 = arith.constant 0 : i32
    %31 = arith.cmpi ne, %30, %c0_i32_17 : i32
    scf.if %31 {
      %c0_18 = arith.constant 0 : index
      %c0_19 = arith.constant 0 : index
      %32 = vector.load %arg17[%c0_18, %c0_19] : memref<8x1xf32, #tpu.memory_space<vmem>>, vector<8x1xf32>
      %c0_20 = arith.constant 0 : index
      %c0_21 = arith.constant 0 : index
      %33 = vector.load %arg18[%c0_20, %c0_21] : memref<8x1xf32, #tpu.memory_space<vmem>>, vector<8x1xf32>
      %cst_22 = arith.constant 1.000000e+00 : f32
      %34 = vector.broadcast %cst_22 : f32 to vector<8x1xf32>
      %35 = arith.divf %34, %33 : vector<8x1xf32>
      %c0_i32_23 = arith.constant 0 : i32
      %c3_i32 = arith.constant 3 : i32
      %36 = arith.addi %c0_i32_23, %c3_i32 : i32
      %c1_i32 = arith.constant 1 : i32
      scf.for %arg19 = %c0_i32_23 to %36 step %c1_i32  : i32 {
        %c128_i32_25 = arith.constant 128 : i32
        %37 = arith.muli %arg19, %c128_i32_25 : i32
        %38 = tpu.assume_multiple %37, 128 : i32
        %c0_26 = arith.constant 0 : index
        %39 = arith.index_cast %38 : i32 to index
        %40 = vector.load %arg14[%c0_26, %39] : memref<8x384xf32, #tpu.memory_space<vmem>>, vector<8x128xf32>
        %41 = vector.broadcast %32 : vector<8x1xf32> to vector<8x128xf32>
        %42 = arith.subf %40, %41 : vector<8x128xf32>
        %43 = math.exp %42 : vector<8x128xf32>
        %44 = vector.broadcast %35 : vector<8x1xf32> to vector<8x128xf32>
        %45 = arith.mulf %43, %44 : vector<8x128xf32>
        %c0_27 = arith.constant 0 : index
        %46 = arith.index_cast %38 : i32 to index
        %47 = vector.load %arg14[%c0_27, %46] : memref<8x384xf32, #tpu.memory_space<vmem>>, vector<8x128xf32>
        tpu.vector_store %arg14[%c0_27, %46], %45 {strides = array<i32>} : memref<8x384xf32, #tpu.memory_space<vmem>>, vector<8x128xf32>,
      }
      %c3_i32_24 = arith.constant 3 : i32
    } else {
    }
    return
  }
  func.func @transform_0(%arg0: i32, %arg1: i32) -> (i32, i32) {
    %c0_i32 = arith.constant 0 : i32
    %c0_i32_0 = arith.constant 0 : i32
    return %arg0, %c0_i32 : i32, i32
  }
  func.func @transform_1(%arg0: i32, %arg1: i32) -> (i32, i32) {
    %c0_i32 = arith.constant 0 : i32
    %c0_i32_0 = arith.constant 0 : i32
    return %arg0, %c0_i32 : i32, i32
  }
  func.func @transform_2(%arg0: i32, %arg1: i32) -> (i32, i32, i32) {
    %c0_i32 = arith.constant 0 : i32
    %c0_i32_0 = arith.constant 0 : i32
    %c0_i32_1 = arith.constant 0 : i32
    return %arg0, %c0_i32, %c0_i32_0 : i32, i32, i32
  }
  func.func @transform_3(%arg0: i32, %arg1: i32) -> (i32, i32) {
    %c0_i32 = arith.constant 0 : i32
    %c0_i32_0 = arith.constant 0 : i32
    %c0_i32_1 = arith.constant 0 : i32
    return %c0_i32, %c0_i32_0 : i32, i32
  }
  func.func @transform_4(%arg0: i32, %arg1: i32) -> (i32, i32) {
    %c0_i32 = arith.constant 0 : i32
    %c0_i32_0 = arith.constant 0 : i32
    %c0_i32_1 = arith.constant 0 : i32
    return %c0_i32, %c0_i32_0 : i32, i32
  }
  func.func @transform_5(%arg0: i32, %arg1: i32) -> (i32, i32) {
    %c0_i32 = arith.constant 0 : i32
    %c0_i32_0 = arith.constant 0 : i32
    %c0_i32_1 = arith.constant 0 : i32
    return %c0_i32, %c0_i32_0 : i32, i32
  }
  func.func @transform_6(%arg0: i32, %arg1: i32) -> (i32, i32) {
    %c0_i32 = arith.constant 0 : i32
    %c0_i32_0 = arith.constant 0 : i32
    %c0_i32_1 = arith.constant 0 : i32
    return %c0_i32, %c0_i32_0 : i32, i32
  }
  func.func @transform_7(%arg0: i32, %arg1: i32) -> (i32, i32) {
    %c0_i32 = arith.constant 0 : i32
    %c0_i32_0 = arith.constant 0 : i32
    %c0_i32_1 = arith.constant 0 : i32
    return %c0_i32, %c0_i32_0 : i32, i32
  }
  func.func @transform_8(%arg0: i32, %arg1: i32) -> (i32, i32) {
    %c0_i32 = arith.constant 0 : i32
    %c0_i32_0 = arith.constant 0 : i32
    %c0_i32_1 = arith.constant 0 : i32
    return %c0_i32, %c0_i32_0 : i32, i32
  }
  func.func @transform_9(%arg0: i32, %arg1: i32) -> (i32, i32) {
    %c0_i32 = arith.constant 0 : i32
    %c0_i32_0 = arith.constant 0 : i32
    %c0_i32_1 = arith.constant 0 : i32
    return %c0_i32, %c0_i32_0 : i32, i32
  }
  func.func @transform_10(%arg0: i32, %arg1: i32) -> (i32, i32) {
    %c0_i32 = arith.constant 0 : i32
    %c0_i32_0 = arith.constant 0 : i32
    return %c0_i32, %arg1 : i32, i32
  }
  func.func @transform_11(%arg0: i32, %arg1: i32) -> (i32, i32) {
    %c0_i32 = arith.constant 0 : i32
    %c0_i32_0 = arith.constant 0 : i32
    return %c0_i32, %arg1 : i32, i32
  }
  func.func @transform_12(%arg0: i32, %arg1: i32) -> (i32, i32) {
    %c0_i32 = arith.constant 0 : i32
    %c0_i32_0 = arith.constant 0 : i32
    return %arg0, %c0_i32 : i32, i32
  }
  func.func @transform_13(%arg0: i32, %arg1: i32) -> (i32, i32) {
    %c0_i32 = arith.constant 0 : i32
    %c0_i32_0 = arith.constant 0 : i32
    return %arg0, %c0_i32 : i32, i32
  }
}

</mosaic_0001>

<bundles_post_ra>
// kernel: luong_attn_decoder_step.1
= control target key start
LH: loop header
LB: loop body
LE: loop exit
PB: predicated region body
PF: predicated region fallthrough
CT: control target
= control target key end

     0   :  { %s3103_s0 = inlined_call_operand.vmem [shape: f32[8,128], index: 0, kind: input, shape index: {}]   ;;  %s3104_s1 = inlined_call_operand.vmem [shape: f32[8,128], index: 1, kind: input, shape index: {}]   ;;  %s3105_s2 = inlined_call_operand.vmem [shape: f32[8,7,128], index: 2, kind: input, shape index: {}]   ;;  %s3106_s3 = inlined_call_operand.hbm [shape: bf16[128,384], index: 3, kind: input, shape index: {}]   ;;  %s3107_s4 = inlined_call_operand.hbm [shape: bf16[128,384], index: 4, kind: input, shape index: {}]   ;;  %s3108_s5 = inlined_call_operand.vmem [shape: f32[1,384], index: 5, kind: input, shape index: {}]   ;;  %s3109_s6 = inlined_call_operand.vmem [shape: f32[1,384], index: 6, kind: input, shape index: {}]   ;;  %s3110_s7 = inlined_call_operand.vmem [shape: bf16[128,128], index: 7, kind: input, shape index: {}]   ;;  %s3111_s8 = inlined_call_operand.hbm [shape: bf16[128,128], index: 8, kind: input, shape index: {}]   ;;  %s3112_s9 = inlined_call_operand.vmem [shape: f32[1,128], index: 9, kind: input, shape index: {}]   ;;  %s3113_s10 = inlined_call_operand.hbm [shape: bf16[128,384], index: 10, kind: input, shape index: {}]   ;;  %s3114_s11 = inlined_call_operand.vmem [shape: f32[1,384], index: 11, kind: input, shape index: {}]   ;;  %s3115_s12 = inlined_call_operand.vmem [shape: f32[8,384], index: 12, kind: output, shape index: {0}]   ;;  %s3116_s13 = inlined_call_operand.vmem [shape: f32[8,128], index: 13, kind: output, shape index: {1}]  }
   0x1   :  { %3121 = sst [smem:[#allocation15_spill]] %s3105_s2 }
   0x2   :  { %3122 = sst [smem:[#allocation16_spill]] %s3106_s3 }
   0x3   :  { %3123 = sst [smem:[#allocation17_spill]] %s3107_s4 }
   0x4   :  { %3124 = sst [smem:[#allocation18_spill]] %s3110_s7 }
   0x5   :  { %3125 = sst [smem:[#allocation19_spill]] %s3111_s8 }
   0x6   :  { %3126 = sst [smem:[#allocation20_spill]] %s3112_s9 }
   0x7   :  { %3127 = sst [smem:[#allocation21_spill]] %s3115_s12 }
   0x8   :  { %3128 = sst [smem:[#allocation22_spill]] %s3116_s13 }
   0x9   :  { %19 = vsyncpa [#allocation6], 0 }
   0xa   :  { %20 = vsyncpa [#allocation8], 0 }
   0xb   :  { %21 = vsyncpa [#allocation11], 0 }
   0xc   :  { %23 = vsyncpa [#allocation11 + $0x1], 0  ;;  %s2757_s25 = smov 0   ;;  %s2759_s26 = smov 0  }
   0xd   :  { %s2761_s27 = smov 0   ;;  %s2763_s28 = smov 0  }
   0xe   :  { %s2765_s29 = smov 0   ;;  %s2767_s30 = smov 0  }
   0xf LB: > { %s1951_s14 = sadd.s32 4294967295, %s2669_s30   ;;  %p286_p0 = scmp.ne.s32.totalorder %s2653_s26, %s2649_s25  ;;  %s2669_s30 = sphi %s2767_s30, %s29_s30   ;;  %s2665_s29 = sphi %s2765_s29, %s3148_s29   ;;  %s2661_s28 = sphi %s2763_s28, %s3147_s28   ;;  %s2657_s27 = sphi %s2761_s27, %s3146_s27   ;;  %s2653_s26 = sphi %s2759_s26, %s3145_s26   ;;  %s2649_s25 = sphi %s2757_s25, %s3144_s25  }
  0x10   : > { %p2787_p1 = scmp.eq.s32.totalorder %s1951_s14, 0  ;;  %p1952_p2 = scmp.ge.s32.totalorder %s2669_s30, 1 }
  0x11   : > { %p375_p3 = scmp.lt.s32.totalorder %s2669_s30, 4  ;;  %s3132_s4 = sld [smem:[#allocation17_spill]] }
  0x12   : > { %p2795_p4 = por %p2787_p1, %p286_p0  ;;  %s2675_s21 = smov [#allocation7]  }
  0x13   : > { %p2799_p5 = pnand %p1952_p2, %p375_p3  ;;  %s425_s22 = sshll.u32 %s2675_s21, 4  ;;  %s426_s22 = int_to_ptr.vmem [resolvable:$true] %s425_s22 }
  0x14   : > { %s3134_s3 = sld [smem:[#allocation16_spill]]  ;;  %s3117_s18 = smov 192  }
  0x15   : > { %p2353_p6 = pneg %p2799_p5  ;;  %s2677_s19 = smov 12  }
  0x16   : > { %s2678_s21 = smov [#allocation5]   ;;  %s3135_s8 = sld [smem:[#allocation19_spill]] }
  0x17   : > { %s423_s20 = sshll.u32 %s3132_s4, 4  ;;  %p2810_p7 = pnand %p2353_p6, %p2787_p1  ;;  %s424_s20 = int_to_ptr.hbm [resolvable:$true] %s423_s20 }
  0x18   : > { %s411_s4 = sshll.u32 %s2678_s21, 4  ;;  %s3118_s25 = smov 64   ;;  %s412_s4 = int_to_ptr.vmem [resolvable:$true] %s411_s4 }
  0x19   : > { %2359 = dma.hbm_to_vmem [thread:$0]  (!%p2810_p7), %s424_s20, 3072, %s426_s22, [#allocation8], %s3117_s18, %s3117_s18, %s2677_s19  }
  0x1a   : > { %s409_s14 = sshll.u32 %s3134_s3, 4  ;;  %s2679_s20 = smov [#allocation9]   ;;  %s410_s14 = int_to_ptr.hbm [resolvable:$true] %s409_s14 }
  0x1b   : > { %2356 = dma.hbm_to_vmem [thread:$0]  (!%p2810_p7), %s410_s14, 3072, %s412_s4, [#allocation6], %s3117_s18, %s3117_s18, %s2677_s19  }
  0x1c   : > { %s446_s24 = sshll.u32 %s3135_s8, 4  ;;  %s448_s22 = sshll.u32 %s2679_s20, 4  ;;  %s447_s24 = int_to_ptr.hbm [resolvable:$true] %s446_s24  ;;  %s449_s22 = int_to_ptr.vmem [resolvable:$true] %s448_s22 }
  0x1d   : > { %s2681_s3 = smov 4   ;;  %s273_s9 = sadd.s32 1, %s2657_s27 }
  0x1e   : > { %2362 = dma.hbm_to_vmem [thread:$0]  (!%p2810_p7), %s447_s24, 1024, %s449_s22, [#allocation8], %s3118_s25, %s3118_s25, %s2681_s3  }
  0x1f   : > { %s38_s12 = sadd.s32 1, %s2665_s29  ;;  %p280_p8 = scmp.ne.s32.totalorder %s2657_s27, %s2653_s26 }
  0x20   : > { %p39_p9 = scmp.ge.s32.totalorder %s38_s12, 3  ;;  %p281_p10 = scmp.eq.s32.totalorder %s2669_s30, 0 }
  0x21   : > { %p2370_p11 = scmp.lt.s32.totalorder %s2669_s30, 3  ;;  %s465_s4 = sand.u32 1, %s2657_s27  }
  0x22   : > { %s3150_s12 = smov (%p39_p9, %s38_s12), 0  ;;  %p282_p12 = por %p281_p10, %p280_p8 }
  0x23   : > { %s270_s14 = ssub.s32 %s2665_s29, %s3150_s12  ;;  %s1960_s19 = sshll.u32 %s465_s4, 6 }
  0x24   : > { %p271_p13 = scmp.eq.s32.totalorder %s270_s14, 0  ;;  %s1961_s23 = sshll.u32 %s2665_s29, 2 }
  0x25   : > { %s469_s21 = scalar_lea.vmem [#allocation10], %s1960_s19  ;;  %s473_s25 = scalar_lea.hbm %s3113_s10, %s1961_s23 }
  0x26   : > { %s476_s20 = sshll.u32 %s469_s21, 4  ;;  %s474_s8 = sshll.u32 %s473_s25, 4  ;;  %s477_s20 = int_to_ptr.vmem [resolvable:$true] %s476_s20  ;;  %s475_s8 = int_to_ptr.hbm [resolvable:$true] %s474_s8 }
  0x27   : > { %s2845_s24 = scalar_select %p271_p13, %s2657_s27, %s273_s9  }
  0x28   : > { %p2364_p0 = pnand %p2370_p11, %p282_p12  ;;  %s466_s13 = scalar_lea.sflag [#allocation11], %s465_s4 }
  0x29   : > { %s3136_s2 = smov 64   ;;  %s3137_s7 = smov 192  }
  0x2a   : > { %2366 = dma.hbm_to_vmem [thread:$0]  (!%p2364_p0), %s475_s8, 1024, %s477_s20, %s466_s13, %s3137_s7, %s3136_s2, %s2681_s3  }
  0x2b   : > { %494 = sbr.rel (%p2799_p5) target bundleno = 1815 (0x717), region = 68 }
  0x30   : > { %2636 = dma.done.wait (%p2787_p1), [#allocation6], 3072  }
  0x31   : > { %2638 = vsyncadd (%p2787_p1), [#allocation6], 4294964224 }
  0x32   : > { %2640 = dma.done.wait (%p2787_p1), [#allocation8], 4096  }
  0x33   : > { %2642 = vsyncadd (%p2787_p1), [#allocation8], 4294963200  ;;  %s511_s18 = sand.u32 1, %s2653_s26  }
  0x34   : > { %s1966_s25 = sshll.u32 %s511_s18, 6  ;;  %s512_s2 = scalar_lea.sflag [#allocation11], %s511_s18 }
  0x35   : > { %s2865_s3 = scalar_lea.vmem [#allocation10], %s1966_s25 }
  0x36   : > { %2644 = dma.done.wait (%p2795_p4), %s512_s2, 1024  }
  0x37   : > { %2646 = vsyncadd (%p2795_p4), %s512_s2, 4294966272  ;;  %p593_p2 = scmp.lt.s32.totalorder %s2661_s28, 2  ;;  %p1967_p1 = scmp.ne.s32.totalorder %s2661_s28, 0 }
  0x38   : > { %s3138_s18 = sld [smem:[#allocation18_spill]] (!%p1967_p1) }
  0x39   : > { %s2873_s7 = scalar_select %p593_p2, %s2661_s28, 2 }
  0x3a   : > { %608 = sbr.rel (%p1967_p1) target bundleno = 1137 (0x471), region = 88  ;;  %s3139_s8 = sld [smem:[#allocation15_spill]] (!%p1967_p1) }
  0x3b   : > { %s595_s15 = scalar_lea.vmem %s3114_s11, %s2873_s7  ;;  %s3140_s17 = sld [smem:[#allocation22_spill]] (!%p1967_p1) }
  0x3c   : > { %s3141_s19 = sld [smem:[#allocation20_spill]] (!%p1967_p1) }
  0x3f   : > { %v2054_v0 = vld [vmem:[#allocation5 + $0xa8] sm:$0xf]  ;;  %v2289_v1 = vld [vmem:[#allocation5 + $0xb0] sm:$0xf0]  ;;  %v2042_v5 = vld [vmem:[#allocation5 + $0x90] sm:$0xf] }
  0x40   : > { %v2150_v2 = vld [vmem:[#allocation7 + $0xa8] sm:$0xf]  ;;  %v2055_v3 = vor.u32 %v2289_v1, %v2054_v0  ;;  %v2313_v4 = vld [vmem:[#allocation7 + $0xb0] sm:$0xf0]  ;;  %v2286_v6 = vld [vmem:[#allocation5 + $0x98] sm:$0xf0] }
  0x41   : > { %v2151_v7 = vor.u32 %v2313_v4, %v2150_v2  ;;  %v2138_v8 = vld [vmem:[#allocation7 + $0x90] sm:$0xf]  ;;  %v2310_v9 = vld [vmem:[#allocation7 + $0x98] sm:$0xf0]  ;;  %v2288_v10 = vld [vmem:[#allocation5 + $0xac] sm:$0xf]  ;;  %v2043_v11 = vor.u32 %v2286_v6, %v2042_v5 }
  0x42   : > { %780 = vmatpush.bf16.msra.mxu0 %v2055_v3  ;;  %v2056_v12 = vld [vmem:[#allocation5 + $0xb4] sm:$0xf0]  ;;  %v2139_v13 = vor.u32 %v2310_v9, %v2138_v8  ;;  %v2283_v16 = vld [vmem:[#allocation5 + $0x80] sm:$0xf0]  ;;  %v2285_v17 = vld [vmem:[#allocation5 + $0x94] sm:$0xf] }
  0x43   : > { %988 = vmatpush.bf16.msra.mxu3 %v2151_v7  ;;  %v2059_v14 = vor.u32 %v2288_v10, %v2056_v12  ;;  %v2030_v15 = vld [vmem:[#allocation5 + $0x78] sm:$0xf]  ;;  %v2307_v19 = vld [vmem:[#allocation7 + $0x80] sm:$0xf0]  ;;  %v2044_v20 = vld [vmem:[#allocation5 + $0x9c] sm:$0xf0] }
  0x44   : > { %v2126_v18 = vld [vmem:[#allocation7 + $0x78] sm:$0xf]  ;;  %v2047_v21 = vor.u32 %v2285_v17, %v2044_v20  ;;  %v2031_v22 = vor.u32 %v2283_v16, %v2030_v15  ;;  %v2282_v23 = vld [vmem:[#allocation5 + $0x7c] sm:$0xf]  ;;  %v2032_v24 = vld [vmem:[#allocation5 + $0x84] sm:$0xf0] }
  0x45   : > { %793 = vmatpush.bf16.msra.mxu1 %v2059_v14  ;;  %v2127_v25 = vor.u32 %v2307_v19, %v2126_v18  ;;  %v2018_v26 = vld [vmem:[#allocation5 + $0x60] sm:$0xf]  ;;  %v2280_v27 = vld [vmem:[#allocation5 + $0x68] sm:$0xf0]  ;;  %v2035_v30 = vor.u32 %v2282_v23, %v2032_v24  ;;  %v2279_v32 = vld [vmem:[#allocation5 + $0x64] sm:$0xf] }
  0x46   : > { %781 = vmatpush.bf16.msra.mxu0 %v2043_v11  ;;  %v2114_v28 = vld [vmem:[#allocation7 + $0x60] sm:$0xf]  ;;  %v2304_v29 = vld [vmem:[#allocation7 + $0x68] sm:$0xf0]  ;;  %v2019_v31 = vor.u32 %v2280_v27, %v2018_v26  ;;  %v2020_v33 = vld [vmem:[#allocation5 + $0x6c] sm:$0xf0] }
  0x47   : > { %989 = vmatpush.bf16.msra.mxu3 %v2139_v13  ;;  %v2115_v34 = vor.u32 %v2304_v29, %v2114_v28  ;;  %v2006_v35 = vld [vmem:[#allocation5 + $0x48] sm:$0xf]  ;;  %v2277_v36 = vld [vmem:[#allocation5 + $0x50] sm:$0xf0]  ;;  %v2023_v39 = vor.u32 %v2279_v32, %v2020_v33  ;;  %v1994_v41 = vld [vmem:[#allocation5 + $0x30] sm:$0xf] }
  0x48   : > { %v2102_v37 = vld [vmem:[#allocation7 + $0x48] sm:$0xf]  ;;  %v2301_v38 = vld [vmem:[#allocation7 + $0x50] sm:$0xf0]  ;;  %v2007_v40 = vor.u32 %v2277_v36, %v2006_v35  ;;  %v2276_v42 = vld [vmem:[#allocation5 + $0x4c] sm:$0xf] }
  0x49   : > { %794 = vmatpush.bf16.msra.mxu1 %v2047_v21  ;;  %v2008_v43 = vld [vmem:[#allocation5 + $0x54] sm:$0xf0]  ;;  %v2103_v44 = vor.u32 %v2301_v38, %v2102_v37  ;;  %v2274_v45 = vld [vmem:[#allocation5 + $0x38] sm:$0xf0]  ;;  %v2062_v46 = vld [vmem:[#allocation5 + $0xb0] sm:$0xf] }
  0x4a   : > { %782 = vmatpush.bf16.msra.mxu0 %v2031_v22  ;;  %v2290_v47 = vld [vmem:[#allocation5 + $0xb8] sm:$0xf0]  ;;  %v2090_v48 = vld [vmem:[#allocation7 + $0x30] sm:$0xf]  ;;  %v2011_v51 = vor.u32 %v2276_v42, %v2008_v43  ;;  %v2050_v52 = vld [vmem:[#allocation5 + $0x98] sm:$0xf]  ;;  %v1995_v53 = vor.u32 %v2274_v45, %v1994_v41 }
  0x4b   : > { %990 = vmatpush.bf16.msra.mxu3 %v2127_v25  ;;  %v2298_v49 = vld [vmem:[#allocation7 + $0x38] sm:$0xf0]  ;;  %v2063_v50 = vor.u32 %v2290_v47, %v2062_v46  ;;  %v2273_v54 = vld [vmem:[#allocation5 + $0x34] sm:$0xf]  ;;  %v1996_v55 = vld [vmem:[#allocation5 + $0x3c] sm:$0xf0] }
  0x4c   : > { %v2287_v56 = vld [vmem:[#allocation5 + $0xa0] sm:$0xf0]  ;;  %v2091_v57 = vor.u32 %v2298_v49, %v2090_v48  ;;  %v1982_v58 = vld [vmem:[#allocation5 + $0x18] sm:$0xf]  ;;  %v2038_v61 = vld [vmem:[#allocation5 + $0x80] sm:$0xf]  ;;  %v1999_v1 = vor.u32 %v2273_v54, %v1996_v55 }
  0x4d   : > { %795 = vmatpush.bf16.msra.mxu1 %v2035_v30  ;;  %806 = vmatpush.bf16.msra.mxu2 %v2063_v50  ;;  %v2271_v59 = vld [vmem:[#allocation5 + $0x20] sm:$0xf0]  ;;  %v2051_v60 = vor.u32 %v2287_v56, %v2050_v52  ;;  %v2078_v62 = vld [vmem:[#allocation7 + $0x18] sm:$0xf]  ;;  %v2284_v0 = vld [vmem:[#allocation5 + $0x88] sm:$0xf0] }
  0x4e   : > { %783 = vmatpush.bf16.msra.mxu0 %v2019_v31  ;;  %v2295_v63 = vld [vmem:[#allocation7 + $0x20] sm:$0xf0]  ;;  %v1970_v2 = vld [vmem:[#allocation5] sm:$0xf]  ;;  %v1983_v3 = vor.u32 %v2271_v59, %v1982_v58  ;;  %v2268_v4 = vld [vmem:[#allocation5 + $0x8] sm:$0xf0]  ;;  %v2039_v7 = vor.u32 %v2284_v0, %v2038_v61 }
  0x4f   : > { %991 = vmatpush.bf16.msra.mxu3 %v2115_v34  ;;  %v2270_v5 = vld [vmem:[#allocation5 + $0x1c] sm:$0xf]  ;;  %v1984_v6 = vld [vmem:[#allocation5 + $0x24] sm:$0xf0]  ;;  %v2079_v8 = vor.u32 %v2295_v63, %v2078_v62  ;;  %v2066_v9 = vld [vmem:[#allocation7] sm:$0xf]  ;;  %v1971_v17 = vor.u32 %v2268_v4, %v1970_v2 }
  0x50   : > { %v2026_v10 = vld [vmem:[#allocation5 + $0x68] sm:$0xf]  ;;  %v2281_v11 = vld [vmem:[#allocation5 + $0x70] sm:$0xf0]  ;;  %v2292_v12 = vld [vmem:[#allocation7 + $0x8] sm:$0xf0]  ;;  %v1987_v15 = vor.u32 %v2270_v5, %v1984_v6 }
  0x51   : > { %796 = vmatpush.bf16.msra.mxu1 %v2023_v39  ;;  %807 = vmatpush.bf16.msra.mxu2 %v2051_v60  ;;  %v2312_v13 = vld [vmem:[#allocation7 + $0xac] sm:$0xf]  ;;  %v2152_v14 = vld [vmem:[#allocation7 + $0xb4] sm:$0xf0]  ;;  %v2267_v18 = vld [vmem:[#allocation5 + $0x4] sm:$0xf]  ;;  %v2027_v21 = vor.u32 %v2281_v11, %v2026_v10  ;;  %v2067_v22 = vor.u32 %v2292_v12, %v2066_v9 }
  0x52   : > { %784 = vmatpush.bf16.msra.mxu0 %v2007_v40  ;;  %v2883_v16 = vld [vmem:[%s3104_s1] sm:$0xff]  ;;  %v2155_v23 = vor.u32 %v2312_v13, %v2152_v14  ;;  %v2309_v24 = vld [vmem:[#allocation7 + $0x94] sm:$0xf]  ;;  %v2314_v26 = vld [vmem:[#allocation7 + $0xb8] sm:$0xf0]  ;;  %vm1114_vm8 = vcmask 1046528  }
  0x53   : > { %992 = vmatpush.bf16.msra.mxu3 %v2103_v44  ;;  %v1972_v19 = vld [vmem:[#allocation5 + $0xc] sm:$0xf0]  ;;  %v2140_v27 = vld [vmem:[#allocation7 + $0x9c] sm:$0xf0]  ;;  %v2278_v29 = vld [vmem:[#allocation5 + $0x58] sm:$0xf0]  ;;  %v2892_v32 = vpack.c.bf16 %v2883_v16, %v2883_v16 }
  0x54   : > { %v609_v20 = vld [vmem:[%s3103_s0] sm:$0xff]  ;;  %v1975_v30 = vor.u32 %v2267_v18, %v1972_v19  ;;  %v2306_v34 = vld [vmem:[#allocation7 + $0x7c] sm:$0xf]  ;;  %v2143_v35 = vor.u32 %v2309_v24, %v2140_v27  ;;  %v2146_v36 = vld [vmem:[#allocation7 + $0x98] sm:$0xf]  ;;  %vm1157_vm9 = vcmask 1041409  }
  0x55   : > { %797 = vmatpush.bf16.msra.mxu1 %v2011_v51  ;;  %808 = vmatpush.bf16.msra.mxu2 %v2039_v7  ;;  %v2158_v25 = vld [vmem:[#allocation7 + $0xb0] sm:$0xf]  ;;  %v2888_v31 = vpack.c.bf16 %v609_v20, %v609_v20  ;;  %v2311_v37 = vld [vmem:[#allocation7 + $0xa0] sm:$0xf0]  ;;  %v2128_v39 = vld [vmem:[#allocation7 + $0x84] sm:$0xf0] }
  0x56   : > { %785 = vmatpush.bf16.msra.mxu0 %v1995_v53  ;;  %v2014_v28 = vld [vmem:[#allocation5 + $0x50] sm:$0xf]  ;;  %v2159_v33 = vor.u32 %v2314_v26, %v2158_v25  ;;  %v2002_v40 = vld [vmem:[#allocation5 + $0x38] sm:$0xf]  ;;  %v2275_v41 = vld [vmem:[#allocation5 + $0x40] sm:$0xf0]  ;;  %v2147_v42 = vor.u32 %v2311_v37, %v2146_v36  ;;  %v2131_v43 = vor.u32 %v2306_v34, %v2128_v39 }
  0x57   : > { %993 = vmatpush.bf16.msra.mxu3 %v2091_v57  ;;  %v2015_v38 = vor.u32 %v2278_v29, %v2014_v28  ;;  %v2303_v44 = vld [vmem:[#allocation7 + $0x64] sm:$0xf]  ;;  %v2134_v45 = vld [vmem:[#allocation7 + $0x80] sm:$0xf]  ;;  %v2308_v46 = vld [vmem:[#allocation7 + $0x88] sm:$0xf0]  ;;  %v2003_v47 = vor.u32 %v2275_v41, %v2002_v40 }
  0x58   : > { %v2116_v48 = vld [vmem:[#allocation7 + $0x6c] sm:$0xf0]  ;;  %v1990_v49 = vld [vmem:[#allocation5 + $0x20] sm:$0xf]  ;;  %v2272_v50 = vld [vmem:[#allocation5 + $0x28] sm:$0xf0]  ;;  %v2135_v51 = vor.u32 %v2308_v46, %v2134_v45 }
  0x59   : > { %798 = vmatpush.bf16.msra.mxu1 %v1999_v1  ;;  %809 = vmatpush.bf16.msra.mxu2 %v2027_v21  ;;  %v2119_v52 = vor.u32 %v2303_v44, %v2116_v48  ;;  %v2300_v53 = vld [vmem:[#allocation7 + $0x4c] sm:$0xf]  ;;  %v2122_v54 = vld [vmem:[#allocation7 + $0x68] sm:$0xf]  ;;  %v2305_v55 = vld [vmem:[#allocation7 + $0x70] sm:$0xf0]  ;;  %v1991_v56 = vor.u32 %v2272_v50, %v1990_v49 }
  0x5a   : > { %786 = vmatpush.bf16.msra.mxu0 %v1983_v3  ;;  %v2104_v57 = vld [vmem:[#allocation7 + $0x54] sm:$0xf0]  ;;  %v1978_v58 = vld [vmem:[#allocation5 + $0x8] sm:$0xf]  ;;  %v2269_v59 = vld [vmem:[#allocation5 + $0x10] sm:$0xf0]  ;;  %v2123_v60 = vor.u32 %v2305_v55, %v2122_v54 }
  0x5b   : > { %994 = vmatpush.bf16.msra.mxu3 %v2079_v8  ;;  %v2107_v61 = vor.u32 %v2300_v53, %v2104_v57  ;;  %v2110_v62 = vld [vmem:[#allocation7 + $0x50] sm:$0xf]  ;;  %v2302_v63 = vld [vmem:[#allocation7 + $0x58] sm:$0xf0]  ;;  %v1979_v0 = vor.u32 %v2269_v59, %v1978_v58  ;;  %v2297_v1 = vld [vmem:[#allocation7 + $0x34] sm:$0xf] }
  0x5c   : > { %v2092_v2 = vld [vmem:[#allocation7 + $0x3c] sm:$0xf0]  ;;  %v2111_v3 = vor.u32 %v2302_v63, %v2110_v62  ;;  %v2098_v5 = vld [vmem:[#allocation7 + $0x38] sm:$0xf]  ;;  %v2299_v6 = vld [vmem:[#allocation7 + $0x40] sm:$0xf0] }
  0x5d   : > { %799 = vmatpush.bf16.msra.mxu1 %v1987_v15  ;;  %810 = vmatpush.bf16.msra.mxu2 %v2015_v38  ;;  %v2095_v4 = vor.u32 %v2297_v1, %v2092_v2  ;;  %v2294_v7 = vld [vmem:[#allocation7 + $0x1c] sm:$0xf]  ;;  %v2080_v8 = vld [vmem:[#allocation7 + $0x24] sm:$0xf0]  ;;  %v2099_v9 = vor.u32 %v2299_v6, %v2098_v5  ;;  %v2086_v11 = vld [vmem:[#allocation7 + $0x20] sm:$0xf] }
  0x5e   : > { %787 = vmatpush.bf16.msra.mxu0 %v1971_v17  ;;  %v2083_v10 = vor.u32 %v2294_v7, %v2080_v8  ;;  %v2296_v12 = vld [vmem:[#allocation7 + $0x28] sm:$0xf0]  ;;  %v2291_v13 = vld [vmem:[#allocation7 + $0x4] sm:$0xf]  ;;  %v2068_v14 = vld [vmem:[#allocation7 + $0xc] sm:$0xf0] }
  0x5f   : > { %995 = vmatpush.bf16.msra.mxu3 %v2067_v22  ;;  %v2087_v15 = vor.u32 %v2296_v12, %v2086_v11  ;;  %v2071_v17 = vor.u32 %v2291_v13, %v2068_v14  ;;  %v2074_v18 = vld [vmem:[#allocation7 + $0x8] sm:$0xf]  ;;  %v2293_v19 = vld [vmem:[#allocation7 + $0x10] sm:$0xf0]  ;;  %v2903_v21 = vld [vmem:[%s3108_s5] sm:$0x7] }
  0x60   : > { %v2075_v20 = vor.u32 %v2293_v19, %v2074_v18  ;;  %v646_v24 = vperm.slane %v2903_v21, 0  ;;  %v2322_v28 = vld [vmem:[%s3138_s18 + $0x38] sm:$0xff]  ;;  %v2320_v36 = vld [vmem:[%s3138_s18 + $0x28] sm:$0xff]  ;;  %v2319_v38 = vld [vmem:[%s3138_s18 + $0x20] sm:$0xff]  ;;  %v648_v6 = vperm.slane %v2903_v21, 2  ;;  %vm1159_vm10 = vcmask 1042434  }
  0x61   : > { %800 = vmatpush.bf16.msra.mxu1 %v1975_v30  ;;  %788 = vmatmul.bf16.vlgmr.msra.gmra.mxu0 %v2888_v31  ;;  %v2318_v41 = vld [vmem:[%s3138_s18 + $0x18] sm:$0xff]  ;;  %v2317_v45 = vld [vmem:[%s3138_s18 + $0x10] sm:$0xff]  ;;  %v2315_v57 = vld [vmem:[%s3138_s18] sm:$0xff]  ;;  %vm1161_vm11 = vcmask 1043459   ;;  %vm1163_vm12 = vcmask 1044484   ;;  %vm1165_vm13 = vcmask 1045509  }
  0x62   : > { %1001 = vmatpush.bf16.msrb.mxu0 %v2155_v23  ;;  %996 = vmatmul.bf16.vlgmr.msra.gmra.mxu3 %v2892_v32  ;;  %v852_v23 = vld [vmem:[%s3109_s6] sm:$0x7]  ;;  %vm1167_vm14 = vcmask 1046534   ;;  %vm1169_vm15 = vcmask 1047559  }
  0x63   : > { %811 = vmatpush.bf16.msra.mxu2 %v2003_v47  ;;  %v854_v26 = vperm.slane %v852_v23, 0  ;;  %1573 = vmatpush.bf16.msrb.mxu3 %v2322_v28  ;;  %v855_v44 = vperm.slane %v852_v23, 1  ;;  %v856_v63 = vperm.slane %v852_v23, 2 }
  0x64   : > { %801 = vmatmul.bf16.vlgmr.msra.gmra.mxu1 %v2888_v31 }
  0x65   : > { %1014 = vmatpush.bf16.msrb.mxu1 %v2159_v33  ;;  %v2321_v33 = vld [vmem:[%s3138_s18 + $0x30] sm:$0xff] }
  0x66   : > { %1002 = vmatpush.bf16.msrb.mxu0 %v2143_v35 }
  0x67   : > { %812 = vmatpush.bf16.msra.mxu2 %v1991_v56  ;;  %1574 = vmatpush.bf16.msrb.mxu3 %v2321_v33 }
  0x69   : > { %1015 = vmatpush.bf16.msrb.mxu1 %v2147_v42 }
  0x6a   : > { %1003 = vmatpush.bf16.msrb.mxu0 %v2131_v43  ;;  %v647_v43 = vperm.slane %v2903_v21, 1 }
  0x6b   : > { %813 = vmatpush.bf16.msra.mxu2 %v1979_v0  ;;  %1575 = vmatpush.bf16.msrb.mxu3 %v2320_v36 }
  0x6d   : > { %1016 = vmatpush.bf16.msrb.mxu1 %v2135_v51  ;;  %v2316_v51 = vld [vmem:[%s3138_s18 + $0x8] sm:$0xff] }
  0x6e   : > { %1004 = vmatpush.bf16.msrb.mxu0 %v2119_v52  ;;  %814 = vmatmul.bf16.vlgmr.msra.gmra.mxu2 %v2888_v31 }
  0x6f   : > { %1576 = vmatpush.bf16.msrb.mxu3 %v2319_v38 }
  0x71   : > { %1017 = vmatpush.bf16.msrb.mxu1 %v2123_v60 }
  0x72   : > { %1005 = vmatpush.bf16.msrb.mxu0 %v2107_v61 }
  0x73   : > { %1577 = vmatpush.bf16.msrb.mxu3 %v2318_v41 }
  0x75   : > { %1018 = vmatpush.bf16.msrb.mxu1 %v2111_v3 }
  0x76   : > { %1006 = vmatpush.bf16.msrb.mxu0 %v2095_v4 }
  0x77   : > { %1578 = vmatpush.bf16.msrb.mxu3 %v2317_v45 }
  0x79   : > { %1019 = vmatpush.bf16.msrb.mxu1 %v2099_v9 }
  0x7a   : > { %1007 = vmatpush.bf16.msrb.mxu0 %v2083_v10 }
  0x7b   : > { %1579 = vmatpush.bf16.msrb.mxu3 %v2316_v51 }
  0x7d   : > { %1020 = vmatpush.bf16.msrb.mxu1 %v2087_v15 }
  0x7e   : > { %1008 = vmatpush.bf16.msrb.mxu0 %v2071_v17 }
  0x7f   : > { %1580 = vmatpush.bf16.msrb.mxu3 %v2315_v57  ;;  %v2982_v57 = vld [vmem:[%s3139_s8 + $0x30] sm:$0x7f] }
  0x81   : > { %1009 = vmatmul.bf16.vlgmr.msrb.gmra.mxu0 %v2892_v32  ;;  %1021 = vmatpush.bf16.msrb.mxu1 %v2075_v20 }
  0x84   : > { %1022 = vmatmul.bf16.vlgmr.msrb.gmra.mxu1 %v2892_v32 }
  0xde   : > { %v789_v22 = vpop.f32.mrf.mxu0 }
  0xdf   : > { %v790_v27 = vadd.f32 %v789_v22, %v646_v24 }
  0xe1   : > { %v802_v25 = vpop.f32.mrf.mxu1 }
  0xe2   : > { %v803_v46 = vadd.f32 %v802_v25, %v647_v43  ;;  %v2961_v43 = vld [vmem:[%s3139_s8 + $0x8] sm:$0x7f] }
  0xe5   : > { %v997_v29 = vpop.f32.mrf.mxu3 }
  0xe6   : > { %v998_v30 = vadd.f32 %v997_v29, %v854_v26  ;;  %v791_v31 = vpop.f32.mrf.mxu0 }
  0xe8   : > { %v1027_v32 = vadd.f32 %v998_v30, %v790_v27  ;;  %v2939_v27 = vld [vmem:[%s3139_s8] sm:$0x7f] }
  0xe9   : > { %v804_v34 = vpop.f32.mrf.mxu1 }
  0xea   : > { %v2160_v35 = vmul.f32 -1.442695, %v1027_v32  ;;  %v2947_v32 = vld [vmem:[%s3139_s8 + $0x20] sm:$0x7f] }
  0xec   : > { %2446 = vpow2.f32 %v2160_v35 }
  0xed   : > { %v999_v37 = vpop.f32.mrf.mxu3 }
  0xf1   : > { %v815_v42 = vpop.f32.mrf.mxu2 }
  0xf2   : > { %v2447_v39 = vpop.eup %2446  ;;  %v816_v9 = vadd.f32 %v815_v42, %v648_v6 }
  0xf3   : > { %v1031_v40 = vadd.f32 1.0, %v2447_v39 }
  0xf5   : > { %2448 = vrcp.f32 %v1031_v40  ;;  %vm1037_vm0 = vweird.f32 %v1031_v40  ;;  %v1043_v61 = vand.u32 2147483648, %v1031_v40  ;;  %v1041_v0 = vand.u32 2147483647, %v1031_v40 }
  0xf7   : > { %v1044_v4 = vor.u32 1.1754944e-38, %v1043_v61  ;;  %vm1042_vm3 = vcmp.eq.f32.partialorder %v1041_v0, 8.507059e+37  ;;  %v2989_v61 = vld [vmem:[%s3139_s8 + $0x38] sm:$0x7f] }
  0xf9   : > { %v817_v52 = vpop.f32.mrf.mxu2 }
  0xfb   : > { %v2449_v47 = vpop.eup %2448 }
  0xfc   : > { %v1033_v50 = vmul.f32 %v2449_v47, %v1031_v40  ;;  %vm1038_vm1 = vweird.f32 %v2449_v47 }
  0xfd   : > { %vm1039_vm2 = vmor %vm1037_vm0, %vm1038_vm1  ;;  %vm1172_vm0 = vcmask 56320   ;;  %vm1595_vm1 = vcmask 7168  }
  0xfe   : > { %v1010_v48 = vpop.f32.mrf.mxu0  ;;  %v1034_v55 = vsub.f32 1.0, %v1033_v50 }
  0xff   : > { %v1011_v49 = vadd.f32 %v1010_v48, %v855_v44  ;;  %v2968_v48 = vld [vmem:[%s3139_s8 + $0x28] sm:$0x7f] }
 0x100   : > { %v1035_v58 = vmul.f32 %v2449_v47, %v1034_v55 }
 0x101   : > { %v1047_v53 = vadd.f32 %v1011_v49, %v803_v46  ;;  %v1023_v54 = vpop.f32.mrf.mxu1  ;;  %v2973_v49 = vld [vmem:[%s3139_s8 + $0x18] sm:$0x7f] }
 0x102   : > { %v1036_v60 = vadd.f32 %v2449_v47, %v1035_v58  ;;  %v1024_v5 = vadd.f32 %v1023_v54, %v856_v63 }
 0x103   : > { %v2161_v56 = vmul.f32 -1.442695, %v1047_v53 }
 0x104   : > { %v1040_v3 = vsel %vm1039_vm2, %v2449_v47, %v1036_v60 }
 0x105   : > { %2450 = vpow2.f32 %v2161_v56  ;;  %v1045_v7 = vsel %vm1042_vm3, %v1044_v4, %v1040_v3  ;;  %v1147_v3 = vlaneseq }
 0x106   : > { %v1012_v59 = vpop.f32.mrf.mxu0  ;;  %v1067_v8 = vmul.f32 %v1045_v7, %v1024_v5 }
 0x107   : > { %v2995_v6 = vand.u32 127, %v1147_v3 }
 0x108   : > { %v1068_v12 = vadd.f32 %v1067_v8, %v816_v9 }
 0x109   : > { %v1025_v62 = vpop.f32.mrf.mxu1 }
 0x10b   : > { %v2451_v1 = vpop.eup %2450 }
 0x10c   : > { %v1051_v2 = vadd.f32 1.0, %v2451_v1 }
 0x10e   : > { %2452 = vrcp.f32 %v1051_v2  ;;  %v1063_v14 = vand.u32 2147483648, %v1051_v2  ;;  %v1061_v17 = vand.u32 2147483647, %v1051_v2  ;;  %vm1057_vm5 = vweird.f32 %v1051_v2 }
 0x10f   : > { %2454 = vtanh.f32 %v1068_v12 }
 0x110   : > { %v1064_v19 = vor.u32 1.1754944e-38, %v1063_v14  ;;  %vm1062_vm7 = vcmp.eq.f32.partialorder %v1061_v17, 8.507059e+37 }
 0x114   : > { %v2453_v10 = vpop.eup %2452 }
 0x115   : > { %v1053_v11 = vmul.f32 %v2453_v10, %v1051_v2  ;;  %vm1058_vm4 = vweird.f32 %v2453_v10  ;;  %v2455_v23 = vpop.eup %2454 }
 0x116   : > { %vm1059_vm6 = vmor %vm1057_vm5, %vm1058_vm4 }
 0x117   : > { %v1054_v13 = vsub.f32 1.0, %v1053_v11 }
 0x119   : > { %v1055_v15 = vmul.f32 %v2453_v10, %v1054_v13 }
 0x11b   : > { %v1056_v18 = vadd.f32 %v2453_v10, %v1055_v15 }
 0x11d   : > { %v1060_v20 = vsel %vm1059_vm6, %v2453_v10, %v1056_v18 }
 0x11e   : > { %v1065_v22 = vsel %vm1062_vm7, %v1064_v19, %v1060_v20 }
 0x11f   : > { %v1070_v21 = vsub.f32 1.0, %v1065_v22  ;;  %v1072_v25 = vmul.f32 %v1065_v22, %v2883_v16  ;;  %v2952_v16 = vld [vmem:[%s3139_s8 + $0x10] sm:$0x7f] }
 0x121   : > { %v1071_v24 = vmul.f32 %v2455_v23, %v1070_v21 }
 0x123   : > { %v1073_v26 = vadd.f32 %v1072_v25, %v1071_v24 }
 0x125   : > { %1594 = vst [vmem:[%s3140_s17] sm:$0xff] %v1073_v26  ;;  %v1398_v28 = vpack.c.bf16 %v1073_v26, %v1073_v26  ;;  %v1090_v29 = vperm.slane %v1073_v26, 0  ;;  %v1086_v30 = vrot.slane %v1073_v26, 4  ;;  %v1084_v31 = vrot.slane %v1073_v26, 2 }
 0x126   : > { %v1083_v33 = vrot.slane %v1073_v26, 1  ;;  %v1087_v34 = vrot.slane %v1073_v26, 5  ;;  %v1085_v38 = vrot.slane %v1073_v26, 3  ;;  %v1088_v51 = vrot.slane %v1073_v26, 6 }
 0x127   : > { %1581 = vmatmul.bf16.vlgmr.msrb.gmra.mxu3 %v1398_v28  ;;  %v1106_v35 = vmul.f32 %v1090_v29, %v2939_v27  ;;  %v1094_v36 = vperm.slane %v1086_v30, 0  ;;  %v1092_v37 = vperm.slane %v1084_v31, 0  ;;  %v1089_v54 = vrot.slane %v1073_v26, 7 }
 0x128   : > { %v1091_v42 = vperm.slane %v1083_v33, 0  ;;  %v1095_v46 = vperm.slane %v1087_v34, 0  ;;  %v1093_v47 = vperm.slane %v1085_v38, 0  ;;  %v1096_v56 = vperm.slane %v1088_v51, 0 }
 0x129   : > { %v1115_v39 = vsel %vm1114_vm8, %v1106_v35, 0.0  ;;  %v1110_v40 = vmul.f32 %v1094_v36, %v2947_v32  ;;  %v1108_v41 = vmul.f32 %v1092_v37, %v2952_v16  ;;  %v1097_v60 = vperm.slane %v1089_v54, 0 }
 0x12a   : > { %1116 = vadd.xlane.f32.xlu0 %v1115_v39  ;;  %v1107_v50 = vmul.f32 %v1091_v42, %v2961_v43  ;;  %v1111_v52 = vmul.f32 %v1095_v46, %v2968_v48  ;;  %v1109_v53 = vmul.f32 %v1093_v47, %v2973_v49  ;;  %v1112_v62 = vmul.f32 %v1096_v56, %v2982_v57 }
 0x12b   : > { %v1127_v44 = vsel %vm1114_vm8, %v1110_v40, 0.0  ;;  %v1121_v45 = vsel %vm1114_vm8, %v1108_v41, 0.0  ;;  %v1113_v63 = vmul.f32 %v1097_v60, %v2989_v61  ;;  %v2682_v33 = vmov 0  }
 0x12c   : > { %1128 = vadd.xlane.f32.xlu2 %v1127_v44  ;;  %1122 = vadd.xlane.f32.xlu1 %v1121_v45  ;;  %v1118_v55 = vsel %vm1114_vm8, %v1107_v50, 0.0  ;;  %v1130_v58 = vsel %vm1114_vm8, %v1111_v52, 0.0  ;;  %v1124_v59 = vsel %vm1114_vm8, %v1109_v53, 0.0  ;;  %v1133_v0 = vsel %vm1114_vm8, %v1112_v62, 0.0 }
 0x12d   : > { %v1136_v1 = vsel %vm1114_vm8, %v1113_v63, 0.0  ;;  %2444 = vset.pattern.permute.xlu2 %v2682_v33  ;;  %2443 = vset.pattern.permute.xlu1 %v2682_v33 }
 0x12e   : > { %2442 = vset.pattern.permute.xlu0 %v2682_v33 }
 0x132   : > { %1119 = vadd.xlane.f32.xlu0 %v1118_v55 }
 0x134   : > { %1131 = vadd.xlane.f32.xlu2 %v1130_v58  ;;  %1125 = vadd.xlane.f32.xlu1 %v1124_v59 }
 0x13a   : > { %1134 = vadd.xlane.f32.xlu0 %v1133_v0 }
 0x13c   : > { %1137 = vadd.xlane.f32.xlu1 %v1136_v1 }
 0x19d   : > { %v1117_v2 = vpop.xlane.xlu0 %1116 }
 0x19e   : > { %v1149_v8 = vperm.slane %v1117_v2, %v2995_v6 }
 0x19f   : > { %v1123_v4 = vpop.xlane.xlu1 %1122  ;;  %v1129_v5 = vpop.xlane.xlu2 %1128 }
 0x1a0   : > { %v1151_v10 = vperm.slane %v1123_v4, %v2995_v6  ;;  %v1153_v15 = vperm.slane %v1129_v5, %v2995_v6 }
 0x1a5   : > { %v1120_v7 = vpop.xlane.xlu0 %1119 }
 0x1a6   : > { %v1150_v9 = vperm.slane %v1120_v7, %v2995_v6 }
 0x1a7   : > { %v1126_v11 = vpop.xlane.xlu1 %1125  ;;  %v1132_v17 = vpop.xlane.xlu2 %1131 }
 0x1a8   : > { %v1158_v12 = vsel %vm1157_vm9, %v1150_v9, %v1149_v8  ;;  %v1152_v13 = vperm.slane %v1126_v11, %v2995_v6  ;;  %v1154_v22 = vperm.slane %v1132_v17, %v2995_v6 }
 0x1a9   : > { %v1160_v14 = vsel %vm1159_vm10, %v1151_v10, %v1158_v12 }
 0x1aa   : > { %v1162_v18 = vsel %vm1161_vm11, %v1152_v13, %v1160_v14  ;;  %v3005_v19 = vpop.f32.mrf.mxu3 }
 0x1ab   : > { %v1164_v20 = vsel %vm1163_vm12, %v1153_v15, %v1162_v18 }
 0x1ac   : > { %v1166_v25 = vsel %vm1165_vm13, %v1154_v22, %v1164_v20 }
 0x1ad   : > { %v1135_v21 = vpop.xlane.xlu0 %1134 }
 0x1ae   : > { %v1155_v23 = vperm.slane %v1135_v21, %v2995_v6 }
 0x1af   : > { %v1138_v24 = vpop.xlane.xlu1 %1137 }
 0x1b0   : > { %v1156_v26 = vperm.slane %v1138_v24, %v2995_v6  ;;  %v1168_v28 = vsel %vm1167_vm14, %v1155_v23, %v1166_v25 }
 0x1b2   : > { %v1584_v29 = vpop.f32.mrf.mxu3  ;;  %v1170_v30 = vsel %vm1169_vm15, %v1156_v26, %v1168_v28 }
 0x1b3   : > { %v1173_v31 = vsel %vm1172_vm0, %v1170_v30, -inf }
 0x1b4   : > { %1174 = vmax.xlane.f32.xlu2 %v1173_v31 }
 0x227   : > { %v1175_v34 = vpop.xlane.xlu2 %1174 }
 0x228   : > { %v1179_v35 = vperm.slane %v1175_v34, 2  ;;  %v1178_v36 = vperm.slane %v1175_v34, 1  ;;  %v1177_v37 = vperm.slane %v1175_v34, 0  ;;  %v1180_v41 = vperm.slane %v1175_v34, 3 }
 0x229   : > { %v1181_v42 = vperm.slane %v1175_v34, 4  ;;  %v1184_v44 = vperm.slane %v1175_v34, 7  ;;  %v1182_v54 = vperm.slane %v1175_v34, 5  ;;  %v1183_v56 = vperm.slane %v1175_v34, 6 }
 0x22a   : > { %v1195_v38 = vsub.f32 %v1123_v4, %v1179_v35  ;;  %v1194_v39 = vsub.f32 %v1120_v7, %v1178_v36  ;;  %v1193_v40 = vsub.f32 %v1117_v2, %v1177_v37  ;;  %v1196_v50 = vsub.f32 %v1126_v11, %v1180_v41 }
 0x22b   : > { %v1197_v51 = vsub.f32 %v1129_v5, %v1181_v42  ;;  %v1200_v52 = vsub.f32 %v1138_v24, %v1184_v44  ;;  %v1198_v63 = vsub.f32 %v1132_v17, %v1182_v54  ;;  %v1199_v0 = vsub.f32 %v1135_v21, %v1183_v56 }
 0x22c   : > { %v1205_v45 = vmul.f32 1.442695, %v1195_v38  ;;  %v1203_v46 = vmul.f32 1.442695, %v1194_v39  ;;  %v1201_v47 = vmul.f32 1.442695, %v1193_v40 }
 0x22d   : > { %v1207_v53 = vmul.f32 1.442695, %v1196_v50  ;;  %v1209_v55 = vmul.f32 1.442695, %v1197_v51  ;;  %v1215_v59 = vmul.f32 1.442695, %v1200_v52 }
 0x22e   : > { %2456 = vpow2.f32 %v1205_v45  ;;  %v1211_v1 = vmul.f32 1.442695, %v1198_v63  ;;  %v1213_v2 = vmul.f32 1.442695, %v1199_v0 }
 0x22f   : > { %2458 = vpow2.f32 %v1203_v46 }
 0x230   : > { %2460 = vpow2.f32 %v1201_v47 }
 0x231   : > { %2462 = vpow2.f32 %v1207_v53 }
 0x232   : > { %2464 = vpow2.f32 %v1209_v55 }
 0x233   : > { %2466 = vpow2.f32 %v1215_v59  ;;  %v2330_v59 = vld [vmem:[#allocation9 + $0x38] sm:$0xff] }
 0x234   : > { %v3015_v58 = vpop.eup %2456  ;;  %2468 = vpow2.f32 %v1211_v1  ;;  %1512 = vmatpush.bf16.msrb.mxu2 %v2330_v59 }
 0x235   : > { %v2459_v60 = vpop.eup %2458  ;;  %1232 = vperm.xlu2 %2444, %v3015_v58   ;;  %2470 = vpow2.f32 %v1213_v2  ;;  %v2327_v2 = vld [vmem:[#allocation9 + $0x20] sm:$0xff] }
 0x236   : > { %v2461_v62 = vpop.eup %2460  ;;  %1229 = vperm.xlu1 %2443, %v2459_v60  }
 0x237   : > { %1226 = vperm.xlu0 %2442, %v2461_v62   ;;  %v2463_v3 = vpop.eup %2462 }
 0x238   : > { %v2465_v4 = vpop.eup %2464 }
 0x239   : > { %v2467_v5 = vpop.eup %2466 }
 0x23a   : > { %v2469_v7 = vpop.eup %2468 }
 0x23b   : > { %v2471_v8 = vpop.eup %2470 }
 0x23d   : > { %1235 = vperm.xlu2 %2444, %v2463_v3  }
 0x23e   : > { %1238 = vperm.xlu1 %2443, %v2465_v4  }
 0x23f   : > { %1247 = vperm.xlu0 %2442, %v2467_v5  }
 0x245   : > { %1241 = vperm.xlu2 %2444, %v2469_v7  }
 0x246   : > { %1244 = vperm.xlu1 %2443, %v2471_v8  }
 0x28f   : > { %v1233_v9 = vpop.permute.xlu2 %1232 }
 0x290   : > { %v1251_v18 = vperm.slane %v1233_v9, %v2995_v6 }
 0x297   : > { %v1236_v12 = vpop.permute.xlu2 %1235 }
 0x298   : > { %v1252_v21 = vperm.slane %v1236_v12, %v2995_v6 }
 0x29f   : > { %v1242_v23 = vpop.permute.xlu2 %1241 }
 0x2a0   : > { %v1254_v28 = vperm.slane %v1242_v23, %v2995_v6 }
 0x2a8   : > { %v1230_v10 = vpop.permute.xlu1 %1229 }
 0x2a9   : > { %v1227_v11 = vpop.permute.xlu0 %1226  ;;  %v1250_v13 = vperm.slane %v1230_v10, %v2995_v6 }
 0x2aa   : > { %v1249_v14 = vperm.slane %v1227_v11, %v2995_v6 }
 0x2ac   : > { %v1257_v15 = vsel %vm1157_vm9, %v1250_v13, %v1249_v14  ;;  %v2325_v14 = vld [vmem:[#allocation9 + $0x10] sm:$0xff] }
 0x2ad   : > { %v1258_v20 = vsel %vm1159_vm10, %v1251_v18, %v1257_v15 }
 0x2ae   : > { %v1259_v24 = vsel %vm1161_vm11, %v1252_v21, %v1258_v20  ;;  %v2324_v20 = vld [vmem:[#allocation9 + $0x8] sm:$0xff] }
 0x2b0   : > { %v1239_v17 = vpop.permute.xlu1 %1238 }
 0x2b1   : > { %v1253_v22 = vperm.slane %v1239_v17, %v2995_v6  ;;  %v1248_v26 = vpop.permute.xlu0 %1247 }
 0x2b2   : > { %v1256_v31 = vperm.slane %v1248_v26, %v2995_v6 }
 0x2b3   : > { %v1260_v25 = vsel %vm1163_vm12, %v1253_v22, %v1259_v24 }
 0x2b4   : > { %v1261_v33 = vsel %vm1165_vm13, %v1254_v28, %v1260_v25  ;;  %v2323_v28 = vld [vmem:[#allocation9] sm:$0xff] }
 0x2b8   : > { %v1245_v29 = vpop.permute.xlu1 %1244 }
 0x2b9   : > { %v1255_v30 = vperm.slane %v1245_v29, %v2995_v6 }
 0x2bb   : > { %v1262_v34 = vsel %vm1167_vm14, %v1255_v30, %v1261_v33 }
 0x2bc   : > { %v1263_v35 = vsel %vm1169_vm15, %v1256_v31, %v1262_v34 }
 0x2bd   : > { %v1265_v36 = vsel %vm1172_vm0, %v1263_v35, 0.0 }
 0x2be   : > { %1266 = vadd.xlane.f32.xlu2 %v1265_v36 }
 0x331   : > { %v1267_v37 = vpop.xlane.xlu2 %1266 }
 0x332   : > { %2472 = vrcp.f32 %v1267_v37 }
 0x338   : > { %v2473_v38 = vpop.eup %2472 }
 0x339   : > { %v1271_v39 = vperm.slane %v2473_v38, 1  ;;  %v1270_v40 = vperm.slane %v2473_v38, 0  ;;  %v1273_v44 = vperm.slane %v2473_v38, 3  ;;  %v1272_v6 = vperm.slane %v2473_v38, 2 }
 0x33a   : > { %v1275_v47 = vperm.slane %v2473_v38, 5  ;;  %v1274_v50 = vperm.slane %v2473_v38, 4  ;;  %v1277_v53 = vperm.slane %v2473_v38, 7  ;;  %v1276_v54 = vperm.slane %v2473_v38, 6 }
 0x33b   : > { %v1287_v41 = vmul.f32 %v2459_v60, %v1271_v39  ;;  %v1286_v42 = vmul.f32 %v2461_v62, %v1270_v40  ;;  %v1289_v45 = vmul.f32 %v2463_v3, %v1273_v44  ;;  %v1288_v46 = vmul.f32 %v3015_v58, %v1272_v6  ;;  %v2329_v60 = vld [vmem:[#allocation9 + $0x30] sm:$0xff]  ;;  %v2328_v62 = vld [vmem:[#allocation9 + $0x28] sm:$0xff] }
 0x33c   : > { %v1291_v51 = vmul.f32 %v2469_v7, %v1275_v47  ;;  %v1290_v52 = vmul.f32 %v2465_v4, %v1274_v50  ;;  %v1293_v55 = vmul.f32 %v2467_v5, %v1277_v53  ;;  %v1292_v56 = vmul.f32 %v2471_v8, %v1276_v54  ;;  %1513 = vmatpush.bf16.msrb.mxu2 %v2329_v60  ;;  %v2326_v8 = vld [vmem:[#allocation9 + $0x18] sm:$0xff] }
 0x33d   : > { %1301 = vperm.xlu0 %2442, %v1287_v41   ;;  %1296 = vperm.xlu1 %2443, %v1286_v42  }
 0x340   : > { %1514 = vmatpush.bf16.msrb.mxu2 %v2328_v62 }
 0x344   : > { %1515 = vmatpush.bf16.msrb.mxu2 %v2327_v2 }
 0x345   : > { %1311 = vperm.xlu0 %2442, %v1289_v45   ;;  %1306 = vperm.xlu1 %2443, %v1288_v46  }
 0x348   : > { %1516 = vmatpush.bf16.msrb.mxu2 %v2326_v8 }
 0x34c   : > { %1517 = vmatpush.bf16.msrb.mxu2 %v2325_v14 }
 0x34d   : > { %1321 = vperm.xlu0 %2442, %v1291_v51   ;;  %1316 = vperm.xlu1 %2443, %v1290_v52  }
 0x350   : > { %1518 = vmatpush.bf16.msrb.mxu2 %v2324_v20 }
 0x354   : > { %1519 = vmatpush.bf16.msrb.mxu2 %v2323_v28 }
 0x355   : > { %1331 = vperm.xlu0 %2442, %v1293_v55   ;;  %1326 = vperm.xlu1 %2443, %v1292_v56  }
 0x3af   : > { %v1302_v58 = vpop.permute.xlu0 %1301  ;;  %v1297_v63 = vpop.permute.xlu1 %1296 }
 0x3b0   : > { %v1335_v0 = vmul.f32 %v1302_v58, %v2961_v43  ;;  %v1334_v1 = vmul.f32 %v1297_v63, %v2939_v27 }
 0x3b2   : > { %v1349_v3 = vsel %vm1114_vm8, %v1335_v0, 0.0  ;;  %v1342_v4 = vsel %vm1114_vm8, %v1334_v1, 0.0 }
 0x3b3   : > { %v1350_v5 = vrot.slane %v1349_v3, 4  ;;  %v1343_v7 = vrot.slane %v1342_v4, 4 }
 0x3b5   : > { %v1351_v9 = vadd.f32 %v1350_v5, %v1349_v3  ;;  %v1344_v10 = vadd.f32 %v1343_v7, %v1342_v4 }
 0x3b7   : > { %v1312_v11 = vpop.permute.xlu0 %1311  ;;  %v1307_v12 = vpop.permute.xlu1 %1306  ;;  %v1352_v27 = vrot.slane %v1351_v9, 2  ;;  %v1345_v15 = vrot.slane %v1344_v10, 2 }
 0x3b8   : > { %v1337_v13 = vmul.f32 %v1312_v11, %v2973_v49  ;;  %v1336_v43 = vmul.f32 %v1307_v12, %v2952_v16 }
 0x3b9   : > { %v1353_v23 = vadd.f32 %v1352_v27, %v1351_v9  ;;  %v1346_v24 = vadd.f32 %v1345_v15, %v1344_v10 }
 0x3ba   : > { %v1363_v17 = vsel %vm1114_vm8, %v1337_v13, 0.0  ;;  %v1356_v18 = vsel %vm1114_vm8, %v1336_v43, 0.0 }
 0x3bb   : > { %v1364_v22 = vrot.slane %v1363_v17, 4  ;;  %v1357_v21 = vrot.slane %v1356_v18, 4  ;;  %v1354_v34 = vrot.slane %v1353_v23, 1  ;;  %v1347_v35 = vrot.slane %v1346_v24, 1 }
 0x3bd   : > { %v1365_v25 = vadd.f32 %v1364_v22, %v1363_v17  ;;  %v1358_v26 = vadd.f32 %v1357_v21, %v1356_v18  ;;  %v1355_v44 = vadd.f32 %v1354_v34, %v1353_v23  ;;  %v1348_v6 = vadd.f32 %v1347_v35, %v1346_v24 }
 0x3bf   : > { %v1366_v49 = vrot.slane %v1365_v25, 2  ;;  %v1359_v29 = vrot.slane %v1358_v26, 2  ;;  %v1322_v16 = vpop.permute.xlu0 %1321  ;;  %v1317_v30 = vpop.permute.xlu1 %1316  ;;  %v1416_v55 = vpack.c.bf16 %v1355_v44, %v1355_v44  ;;  %v1415_v56 = vpack.c.bf16 %v1348_v6, %v1348_v6 }
 0x3c0   : > { %v1339_v31 = vmul.f32 %v1322_v16, %v2968_v48  ;;  %v1338_v33 = vmul.f32 %v1317_v30, %v2947_v32 }
 0x3c1   : > { %v1360_v36 = vadd.f32 %v1359_v29, %v1358_v26  ;;  %v1367_v37 = vadd.f32 %v1366_v49, %v1365_v25  ;;  %v1448_v5 = vunpack.c.l.b16 %v1416_v55 }
 0x3c2   : > { %v1377_v38 = vsel %vm1114_vm8, %v1339_v31, 0.0  ;;  %v1370_v39 = vsel %vm1114_vm8, %v1338_v33, 0.0 }
 0x3c3   : > { %v1361_v40 = vrot.slane %v1360_v36, 1  ;;  %v1378_v41 = vrot.slane %v1377_v38, 4  ;;  %v1371_v42 = vrot.slane %v1370_v39, 4  ;;  %v1368_v46 = vrot.slane %v1367_v37, 1 }
 0x3c5   : > { %v1379_v45 = vadd.f32 %v1378_v41, %v1377_v38  ;;  %v1372_v47 = vadd.f32 %v1371_v42, %v1370_v39  ;;  %v1362_v48 = vadd.f32 %v1361_v40, %v1360_v36  ;;  %v1369_v60 = vadd.f32 %v1368_v46, %v1367_v37  ;;  %v2445_v39 = vld [vmem:[%s3141_s19] ss:$0 sm:$0xff] }
 0x3c6   : > { %v2683_v37 = vmov -inf   ;;  %v2684_v38 = vmov 0.0  }
 0x3c7   : > { %v1380_v50 = vrot.slane %v1379_v45, 2  ;;  %v1332_v32 = vpop.permute.xlu0 %1331  ;;  %v1327_v51 = vpop.permute.xlu1 %1326  ;;  %v1373_v52 = vrot.slane %v1372_v47, 2  ;;  %v1417_v0 = vpack.c.bf16 %v1362_v48, %v1362_v48  ;;  %v1418_v9 = vpack.c.bf16 %v1369_v60, %v1369_v60  ;;  %1596 = vst.msk [vmem:[#allocation3] sm:$0xff] %vm1595_vm1, %v2683_v37 }
 0x3c8   : > { %v1341_v53 = vmul.f32 %v1332_v32, %v2989_v61  ;;  %v1340_v54 = vmul.f32 %v1327_v51, %v2982_v57  ;;  %v1447_v61 = vunpack.c.l.b16 %v1415_v56  ;;  %1597 = vst.msk [vmem:[#allocation4] sm:$0xff] %vm1595_vm1, %v2684_v38 }
 0x3c9   : > { %v1381_v59 = vadd.f32 %v1380_v50, %v1379_v45  ;;  %v1374_v62 = vadd.f32 %v1373_v52, %v1372_v47  ;;  %v1449_v11 = vunpack.c.l.b16 %v1417_v0  ;;  %v1450_v17 = vunpack.c.l.b16 %v1418_v9 }
 0x3ca   : > { %v1391_v58 = vsel %vm1114_vm8, %v1341_v53, 0.0  ;;  %v1384_v63 = vsel %vm1114_vm8, %v1340_v54, 0.0  ;;  %v1455_v15 = vsel %vm1157_vm9, %v1448_v5, %v1447_v61 }
 0x3cb   : > { %v1382_v1 = vrot.slane %v1381_v59, 1  ;;  %v1392_v2 = vrot.slane %v1391_v58, 4  ;;  %v1385_v3 = vrot.slane %v1384_v63, 4  ;;  %v1375_v4 = vrot.slane %v1374_v62, 1 }
 0x3cc   : > { %v1456_v20 = vsel %vm1159_vm10, %v1449_v11, %v1455_v15 }
 0x3cd   : > { %v1393_v7 = vadd.f32 %v1392_v2, %v1391_v58  ;;  %v1386_v8 = vadd.f32 %v1385_v3, %v1384_v63  ;;  %v1383_v57 = vadd.f32 %v1382_v1, %v1381_v59  ;;  %v1376_v10 = vadd.f32 %v1375_v4, %v1374_v62 }
 0x3ce   : > { %v1457_v28 = vsel %vm1161_vm11, %v1450_v17, %v1456_v20 }
 0x3cf   : > { %v1394_v12 = vrot.slane %v1393_v7, 2  ;;  %v1387_v13 = vrot.slane %v1386_v8, 2  ;;  %v1419_v43 = vpack.c.bf16 %v1376_v10, %v1376_v10  ;;  %v1420_v18 = vpack.c.bf16 %v1383_v57, %v1383_v57 }
 0x3d1   : > { %v1395_v14 = vadd.f32 %v1394_v12, %v1393_v7  ;;  %v1388_v27 = vadd.f32 %v1387_v13, %v1386_v8  ;;  %v1451_v22 = vunpack.c.l.b16 %v1419_v43  ;;  %v1452_v26 = vunpack.c.l.b16 %v1420_v18 }
 0x3d3   : > { %v1396_v21 = vrot.slane %v1395_v14, 1  ;;  %v1389_v23 = vrot.slane %v1388_v27, 1  ;;  %v1458_v16 = vsel %vm1163_vm12, %v1451_v22, %v1457_v28 }
 0x3d4   : > { %v1459_v33 = vsel %vm1165_vm13, %v1452_v26, %v1458_v16 }
 0x3d5   : > { %v1397_v24 = vadd.f32 %v1396_v21, %v1395_v14  ;;  %v1390_v25 = vadd.f32 %v1389_v23, %v1388_v27 }
 0x3d7   : > { %v1422_v49 = vpack.c.bf16 %v1397_v24, %v1397_v24  ;;  %v1421_v29 = vpack.c.bf16 %v1390_v25, %v1390_v25 }
 0x3d9   : > { %v1454_v30 = vunpack.c.l.b16 %v1422_v49  ;;  %v1453_v31 = vunpack.c.l.b16 %v1421_v29 }
 0x3db   : > { %v1460_v34 = vsel %vm1167_vm14, %v1453_v31, %v1459_v33 }
 0x3dc   : > { %v1461_v35 = vsel %vm1169_vm15, %v1454_v30, %v1460_v34 }
 0x3dd   : > { %v1462_v36 = vpack.c.b16 %v1461_v35, %v1461_v35 }
 0x3df   : > { %1520 = vmatmul.bf16.vlgmr.msrb.gmra.mxu2 %v1462_v36 }
 0x462   : > { %v1521_v40 = vpop.f32.mrf.mxu2 }
 0x463   : > { %v1583_v41 = vadd.f32 %v3005_v19, %v1521_v40 }
 0x465   : > { %v1590_v42 = vadd.f32 %v2445_v39, %v1583_v41 }
 0x467   : > { %2474 = vtanh.f32 %v1590_v42 }
 0x46a   : > { %v1523_v44 = vpop.f32.mrf.mxu2 }
 0x46d   : > { %v2475_v6 = vpop.eup %2474 }
 0x46e   : > { %v1592_v45 = vpack.c.bf16 %v2475_v6, %v2475_v6 }
 0x470   : > { %1593 = vst [vmem:[#allocation2] sm:$0xf] %v1592_v45 }
 0x471 PF: > { %v2338_v46 = vld [vmem:[%s2865_s3 + $0x38] sm:$0xff]  ;;  %v2337_v47 = vld [vmem:[%s2865_s3 + $0x30] sm:$0xff]  ;;  %v2336_v19 = vld [vmem:[%s2865_s3 + $0x28] sm:$0xff]  ;;  %s2258_s23 = sshll.u32 %s2661_s28, 7  ;;  %s3142_s16 = sld [smem:[#allocation21_spill]]  ;;  %v2685_v60 = vmov 0  }
 0x472   : > { %1667 = vmatpush.bf16.msra.mxu0 %v2338_v46  ;;  %v2335_v48 = vld [vmem:[%s2865_s3 + $0x20] sm:$0xff]  ;;  %v2334_v50 = vld [vmem:[%s2865_s3 + $0x18] sm:$0xff]  ;;  %v2333_v32 = vld [vmem:[%s2865_s3 + $0x10] sm:$0xff]  ;;  %s1681_s21 = sshra.s32 %s2258_s23, 7  ;;  %2476 = vset.pattern.permute.xlu0 %v2685_v60  ;;  %vm1706_vm2 = vcmask 7168   ;;  %p2260_p3 = scmp.ne.s32.totalorder %s2661_s28, 2 }
 0x473   : > { %v2332_v51 = vld [vmem:[%s2865_s3 + $0x8] sm:$0xff]  ;;  %v2331_v52 = vld [vmem:[%s2865_s3] sm:$0xff]  ;;  %s2259_s25 = sshll.u32 %s1681_s21, 3  ;;  %v1686_v62 = vld [vmem:[#allocation3] sm:$0xff]  ;;  %s2671_s3 = smov (!%p2260_p3), 0  }
 0x474   : > { %v2477_v54 = vld [vmem:[%s595_s15] ss:$0 sm:$0xff]  ;;  %v1690_v8 = vld [vmem:[#allocation4] sm:$0xff] }
 0x476   : > { %1668 = vmatpush.bf16.msra.mxu0 %v2337_v47 }
 0x477   : > { %v1598_v53 = vld [vmem:[#allocation2] sm:$0xf]  ;;  %s1684_s17 = scalar_lea.vmem %s3142_s16, %s2259_s25 }
 0x47a   : > { %1669 = vmatpush.bf16.msra.mxu0 %v2336_v19 }
 0x47e   : > { %1670 = vmatpush.bf16.msra.mxu0 %v2335_v48 }
 0x482   : > { %1671 = vmatpush.bf16.msra.mxu0 %v2334_v50 }
 0x486   : > { %1672 = vmatpush.bf16.msra.mxu0 %v2333_v32 }
 0x48a   : > { %1673 = vmatpush.bf16.msra.mxu0 %v2332_v51 }
 0x48e   : > { %1674 = vmatpush.bf16.msra.mxu0 %v2331_v52 }
 0x491   : > { %1675 = vmatmul.bf16.vlgmr.msra.gmra.mxu0 %v1598_v53 }
 0x50e   : > { %v1676_v55 = vpop.f32.mrf.mxu0 }
 0x50f   : > { %v1677_v56 = vadd.f32 %v2477_v54, %v1676_v55 }
 0x511   : > { %1685 = vst [vmem:[%s1684_s17] sm:$0xff] %v1677_v56  ;;  %1687 = vmax.xlane.f32.xlu0 %v1677_v56 }
 0x516   : > { %v1678_v59 = vpop.f32.mrf.mxu0 }
 0x584   : > { %v1688_v58 = vpop.xlane.xlu0 %1687 }
 0x585   : > { %v1689_v63 = vmax.f32 %v1686_v62, %v1688_v58 }
 0x587   : > { %v1691_v0 = vsub.f32 %v1686_v62, %v1689_v63  ;;  %1708 = vst.msk [vmem:[#allocation3] sm:$0xff] %vm1706_vm2, %v1689_v63  ;;  %1697 = vperm.xlu0 %2476, %v1689_v63  }
 0x589   : > { %v1692_v5 = vmul.f32 1.442695, %v1691_v0 }
 0x5f9   : > { %v1698_v1 = vpop.permute.xlu0 %1697 }
 0x5fa   : > { %v1700_v2 = vsub.f32 %v1677_v56, %v1698_v1 }
 0x5fc   : > { %v1701_v3 = vmul.f32 1.442695, %v1700_v2 }
 0x5fe   : > { %2478 = vpow2.f32 %v1701_v3 }
 0x5ff   : > { %2480 = vpow2.f32 %v1692_v5 }
 0x604   : > { %v2479_v4 = vpop.eup %2478 }
 0x605   : > { %1703 = vadd.xlane.f32.xlu1 %v2479_v4  ;;  %v2481_v7 = vpop.eup %2480 }
 0x606   : > { %v1694_v61 = vmul.f32 %v2481_v7, %v1690_v8 }
 0x677   : > { %1712 = sbr.rel (%p2260_p3) target bundleno = 1815 (0x717), region = 92 }
 0x678   : > { %v1704_v9 = vpop.xlane.xlu1 %1703 }
 0x679   : > { %v1705_v57 = vadd.f32 %v1704_v9, %v1694_v61 }
 0x67b   : > { %1707 = vst.msk [vmem:[#allocation4] sm:$0xff] %vm1706_vm2, %v1705_v57 }
 0x67c   : > { %v1713_v10 = vld [vmem:[#allocation3] sm:$0xff] }
 0x682   : > { %v1714_v11 = vld [vmem:[#allocation4] sm:$0xff] }
 0x683   : > { %2482 = vrcp.f32 %v1714_v11  ;;  %v1726_v43 = vand.u32 2147483648, %v1714_v11  ;;  %vm1720_vm3 = vweird.f32 %v1714_v11  ;;  %v1724_v27 = vand.u32 2147483647, %v1714_v11 }
 0x685   : > { %v1727_v17 = vor.u32 1.1754944e-38, %v1726_v43  ;;  %vm1725_vm6 = vcmp.eq.f32.partialorder %v1724_v27, 8.507059e+37 }
 0x689   : > { %v2483_v12 = vpop.eup %2482 }
 0x68a   : > { %v1716_v13 = vmul.f32 %v2483_v12, %v1714_v11  ;;  %vm1721_vm4 = vweird.f32 %v2483_v12 }
 0x68b   : > { %vm1722_vm5 = vmor %vm1720_vm3, %vm1721_vm4 }
 0x68c   : > { %v1717_v14 = vsub.f32 1.0, %v1716_v13 }
 0x68e   : > { %v1718_v15 = vmul.f32 %v2483_v12, %v1717_v14 }
 0x690   : > { %v1719_v18 = vadd.f32 %v2483_v12, %v1718_v15 }
 0x692   : > { %v1723_v20 = vsel %vm1722_vm5, %v2483_v12, %v1719_v18 }
 0x693   : > { %v1728_v22 = vsel %vm1725_vm6, %v1727_v17, %v1723_v20 }
 0x694 LB: >> { %v2686_v21 = vmov 0   ;;  %s2261_s28 = sshll.u32 %s2673_s3, 7  ;;  %s3143_s14 = sld [smem:[#allocation21_spill]]  ;;  %s2673_s3 = sphi %s2671_s3, %s1735_s3  }
 0x695   : >> { %2484 = vset.pattern.permute.xlu0 %v2686_v21  ;;  %s1737_s7 = sshra.s32 %s2261_s28, 7  ;;  %s1735_s3 = sadd.s32 1, %s2673_s3  }
 0x696   : >> { %1744 = vperm.xlu0 %2484, %v1713_v10   ;;  %s2262_s15 = sshll.u32 %s1737_s7, 3  ;;  %p1732_p4 = scmp.ge.s32.totalorder %s1735_s3, 3  }
 0x69a   : >> { %s1740_s19 = scalar_lea.vmem %s3143_s14, %s2262_s15 }
 0x69b   : >> { %v1741_v23 = vld [vmem:[%s1740_s19] sm:$0xff] }
 0x69e   : >> { %1752 = vperm.xlu0 %2484, %v1728_v22  }
 0x708   : >> { %v1745_v24 = vpop.permute.xlu0 %1744 }
 0x709   : >> { %v1747_v25 = vsub.f32 %v1741_v23, %v1745_v24 }
 0x70b   : >> { %v1748_v26 = vmul.f32 1.442695, %v1747_v25 }
 0x70d   : >> { %2485 = vpow2.f32 %v1748_v26 }
 0x710   : >> { %v1753_v49 = vpop.permute.xlu0 %1752 }
 0x712   : > { %1734 = sbr.rel (!%p1732_p4) target bundleno = 1684 (0x694), region = 162 }
 0x713   : >> { %v2486_v28 = vpop.eup %2485 }
 0x714   : >> { %v1755_v29 = vmul.f32 %v2486_v28, %v1753_v49 }
 0x716   : >> { %1756 = vst [vmem:[%s1740_s19] sm:$0xff] %v1755_v29 }
 0x717 PF: > { %s29_s30 = sadd.s32 1, %s2669_s30   ;;  %s3144_s25 = smov %s2653_s26 }
 0x718   : > { %p26_p5 = scmp.ge.s32.totalorder %s29_s30, 5   ;;  %s3145_s26 = smov %s2657_s27 }
 0x719   : > { %s3146_s27 = smov %s2845_s24  ;;  %s3147_s28 = smov %s2665_s29 }
 0x71a   : > { %s3148_s29 = smov %s3150_s12  ;;  %28 = sbr.rel (!%p26_p5) target bundleno = 15 (0xf), region = 173 }
 0x71f   :  { %1792 = vsyncpa [#allocation6], 1 }
 0x720   :  { %1794 = vsyncpa [#allocation6 + $0x1], 1 }
 0x721   :  { %1795 = vsyncpa [#allocation8], 1 }
 0x722   :  { %1796 = vsyncpa [#allocation11], 1 }
 0x723   :  { %1798 = vsyncpa [#allocation11 + $0x1], 1 }

</bundles_post_ra>
